<compile_context>
chip_gen: v7x
topology: tpu7x:2x2x1
jax: 0.10.0
libtpu: 0.0.40
codegen_flags: <defaults>
</compile_context>

<pallas_src>
import functools

import jax
import jax.numpy as jnp
from jax import lax
from jax.experimental import pallas as pl
from jax.experimental.pallas import tpu as pltpu


def _rrcnn_kernel(x_ref, shift_ref, w1_ref, b1_ref, wr1_ref, br1_ref,
                  wr2_ref, br2_ref, o_ref, *, t):
    x = x_ref[...].astype(jnp.float32)                     # (NB*H, W*Cin)
    up = shift_ref[0]                                      # (NB*H, NB*H)
    dn = shift_ref[1]

    # Conv_1x1: block-diagonal (W*Cin, W*Cout) matmul + bias row (no ReLU).
    y0 = jnp.dot(x, w1_ref[...], preferred_element_type=jnp.float32) + b1_ref[...]

    def conv3x3_relu(a, m0, m1, m2, b_row):
        am1 = jnp.dot(up, a, preferred_element_type=jnp.float32)   # a[h-1], 0-padded
        ap1 = jnp.dot(dn, a, preferred_element_type=jnp.float32)   # a[h+1], 0-padded
        acc = (jnp.dot(am1, m0, preferred_element_type=jnp.float32)
               + jnp.dot(a, m1, preferred_element_type=jnp.float32)
               + jnp.dot(ap1, m2, preferred_element_type=jnp.float32)
               + b_row)
        return jnp.maximum(acc, 0.0)

    def recurrent_block(a, w_ref, bias_ref):
        # PyTorch Recurrent_block: x1 = conv(a); then t times: x1 = conv(a + x1)
        m0, m1, m2 = w_ref[0], w_ref[1], w_ref[2]          # (W*Cout, W*Cout) each
        b_row = bias_ref[...]                              # (1, W*Cout)
        x1 = conv3x3_relu(a, m0, m1, m2, b_row)
        for _ in range(t):
            x1 = conv3x3_relu(a + x1, m0, m1, m2, b_row)
        return x1

    r = recurrent_block(y0, wr1_ref, br1_ref)
    r = recurrent_block(r, wr2_ref, br2_ref)
    o_ref[...] = (y0 + r).astype(o_ref.dtype)              # residual: x + RCNN(x)


def _banded_row_mats(w_conv, W):
    """3x3 conv weight (Cout, Cin, 3, 3) -> (3, W*Cin, W*Cout) block-banded mats.

    mats[kh][(w + kw - 1)*Cin + ci, w*Cout + co] = w_conv[co, ci, kh, kw]
    (horizontal taps + w-direction zero padding folded into the weights)."""
    wk = jnp.transpose(w_conv, (2, 3, 1, 0))               # (kh, kw, ci, co)
    mats = []
    for kh in range(3):
        m = sum(jnp.kron(jnp.eye(W, k=-(kw - 1), dtype=w_conv.dtype), wk[kh, kw])
                for kw in range(3))
        mats.append(m)
    return jnp.stack(mats, axis=0)


def _bias_row(b, W):
    return jnp.tile(b, W).reshape(1, W * b.shape[0])


def _shift_mats(nb, H, dtype):
    """(2, nb*H, nb*H) block-diagonal row shifters: (up@a)[r]=a[r-1], (dn@a)[r]=a[r+1],
    with zero rows implementing the padding=1 boundary of each image."""
    n = nb * H
    r = jnp.arange(n)[:, None]
    c = jnp.arange(n)[None, :]
    up = ((c == r - 1) & (r % H != 0)).astype(dtype)
    dn = ((c == r + 1) & (r % H != H - 1)).astype(dtype)
    return jnp.stack([up, dn], axis=0)


def _pick_batch_tile(N, H, max_rows=128):
    """Largest divisor of N whose row-slab (nb*H) is 8-aligned and <= max_rows
    (keeps the quadratic shift-matrix cost negligible vs the banded matmuls)."""
    nb = 1
    for d in range(1, N + 1):
        if N % d == 0 and (d * H) % 8 == 0 and d * H <= max_rows:
            nb = d
    if (nb * H) % 8 != 0:      # e.g. H not a multiple of 8: one step, full batch
        nb = N
    return nb


def rrcnn_block(x_nchw, w1, b1, wr1, br1, wr2, br2, t=2):
    """RRCNN_block forward. x: (N, Cin, H, W); weights in PyTorch layouts."""
    N, Cin, H, W = x_nchw.shape
    Cout = w1.shape[0]
    WCin, WCout = W * Cin, W * Cout

    nb = _pick_batch_tile(N, H)
    NBH = nb * H
    grid = N // nb

    # --- layout glue only: NCHW -> (N*H, W*C), channels fastest (lane-dense) ---
    x = jnp.transpose(x_nchw, (0, 2, 3, 1)).reshape(N * H, WCin)

    f32 = jnp.float32
    # Fold conv weights into lane-dense matrices (stay resident in VMEM).
    m1x1 = jnp.kron(jnp.eye(W, dtype=f32), w1[:, :, 0, 0].astype(f32).T)   # (WCin, WCout)
    mr1 = _banded_row_mats(wr1.astype(f32), W)                             # (3, WCout, WCout)
    mr2 = _banded_row_mats(wr2.astype(f32), W)
    b1r = _bias_row(b1.astype(f32), W)
    br1r = _bias_row(br1.astype(f32), W)
    br2r = _bias_row(br2.astype(f32), W)
    shift = _shift_mats(nb, H, f32)                                        # (2, NBH, NBH)

    out = pl.pallas_call(
        functools.partial(_rrcnn_kernel, t=t),
        out_shape=jax.ShapeDtypeStruct((N * H, WCout), x_nchw.dtype),
        grid_spec=pltpu.PrefetchScalarGridSpec(
            num_scalar_prefetch=0,
            grid=(grid,),   # nb images per step; >1 steps lets v7x use both TCs
            in_specs=[
                pl.BlockSpec((NBH, WCin), lambda n: (n, 0)),
                pl.BlockSpec((2, NBH, NBH), lambda n: (0, 0, 0)),
                pl.BlockSpec((WCin, WCout), lambda n: (0, 0)),
                pl.BlockSpec((1, WCout), lambda n: (0, 0)),
                pl.BlockSpec((3, WCout, WCout), lambda n: (0, 0, 0)),
                pl.BlockSpec((1, WCout), lambda n: (0, 0)),
                pl.BlockSpec((3, WCout, WCout), lambda n: (0, 0, 0)),
                pl.BlockSpec((1, WCout), lambda n: (0, 0)),
            ],
            out_specs=pl.BlockSpec((NBH, WCout), lambda n: (n, 0)),
        ),
        compiler_params=pltpu.CompilerParams(
            dimension_semantics=("parallel",)),
    )(x, shift, m1x1, b1r, mr1, br1r, mr2, br2r)

    y = out.reshape(N, H, W, Cout)
    return jnp.transpose(y, (0, 3, 1, 2))                  # back to NCHW


def rrcnn_block_ref(x, w1, b1, wr1, br1, wr2, br2, t=2):
    """Pure-JAX reference matching the PyTorch RRCNN_block forward."""
    def conv(a, w, b, pad):
        y = lax.conv_general_dilated(
            a, w, window_strides=(1, 1), padding=[(pad, pad), (pad, pad)],
            dimension_numbers=('NCHW', 'OIHW', 'NCHW'),
            precision=lax.Precision.HIGHEST)
        return y + b.reshape(1, -1, 1, 1)

    def rec_block(a, w, b):
        x1 = jax.nn.relu(conv(a, w, b, 1))
        for _ in range(t):
            x1 = jax.nn.relu(conv(a + x1, w, b, 1))
        return x1

    y0 = conv(x, w1, b1, 0)
    r = rec_block(y0, wr1, br1)
    r = rec_block(r, wr2, br2)
    return y0 + r


if __name__ == "__main__":
    ch_in, ch_out, t = 4, 8, 2
    N, H, W = 2, 16, 16

    key = jax.random.PRNGKey(0)
    k = jax.random.split(key, 7)

    x = jax.random.normal(k[0], (N, ch_in, H, W), dtype=jnp.float32)

    # deterministic init mirroring PyTorch Conv2d defaults (uniform, fan_in based)
    bnd1 = 1.0 / (ch_in * 1 * 1) ** 0.5
    w1 = jax.random.uniform(k[1], (ch_out, ch_in, 1, 1), minval=-bnd1, maxval=bnd1,
                            dtype=jnp.float32)
    b1 = jax.random.uniform(k[2], (ch_out,), minval=-bnd1, maxval=bnd1,
                            dtype=jnp.float32)
    bnd3 = 1.0 / (ch_out * 3 * 3) ** 0.5
    wr1 = jax.random.uniform(k[3], (ch_out, ch_out, 3, 3), minval=-bnd3, maxval=bnd3,
                             dtype=jnp.float32)
    br1 = jax.random.uniform(k[4], (ch_out,), minval=-bnd3, maxval=bnd3,
                             dtype=jnp.float32)
    wr2 = jax.random.uniform(k[5], (ch_out, ch_out, 3, 3), minval=-bnd3, maxval=bnd3,
                             dtype=jnp.float32)
    br2 = jax.random.uniform(k[6], (ch_out,), minval=-bnd3, maxval=bnd3,
                             dtype=jnp.float32)

    y = jax.jit(rrcnn_block, static_argnames=("t",))(x, w1, b1, wr1, br1, wr2, br2, t=t)
    y = jax.block_until_ready(y)

    y_ref = rrcnn_block_ref(x, w1, b1, wr1, br1, wr2, br2, t=t)
    assert y.shape == (N, ch_out, H, W)
    max_err = float(jnp.max(jnp.abs(y - y_ref)))
    assert jnp.allclose(y, y_ref, atol=2e-3, rtol=2e-3), f"max abs err {max_err}"

    print("KERNEL_OK")
</pallas_src>

<mosaic_0001>
module attributes {stable_mosaic.version = 11 : i64} {
  func.func @_rrcnn_kernel(%arg0: i32, %arg1: memref<32x64xf32, #tpu.memory_space<vmem>>, %arg2: memref<2x32x32xf32, #tpu.memory_space<vmem>>, %arg3: memref<64x128xf32, #tpu.memory_space<vmem>>, %arg4: memref<1x128xf32, #tpu.memory_space<vmem>>, %arg5: memref<3x128x128xf32, #tpu.memory_space<vmem>>, %arg6: memref<1x128xf32, #tpu.memory_space<vmem>>, %arg7: memref<3x128x128xf32, #tpu.memory_space<vmem>>, %arg8: memref<1x128xf32, #tpu.memory_space<vmem>>, %arg9: memref<32x128xf32, #tpu.memory_space<vmem>>) attributes {dimension_semantics = [#tpu.dimension_semantics<parallel>], iteration_bounds = array<i64: 1>, scalar_prefetch = 0 : i64, scratch_operands = 0 : i64, tpu.core_type = #tpu.core_type<tc>, window_params = [{transform_indices = @transform_0, window_bounds = array<i64: 32, 64>}, {pipeline_mode = #tpu.pipeline_mode<synchronous>, transform_indices = @transform_1, window_bounds = array<i64: 2, 32, 32>}, {pipeline_mode = #tpu.pipeline_mode<synchronous>, transform_indices = @transform_2, window_bounds = array<i64: 64, 128>}, {pipeline_mode = #tpu.pipeline_mode<synchronous>, transform_indices = @transform_3, window_bounds = array<i64: 1, 128>}, {pipeline_mode = #tpu.pipeline_mode<synchronous>, transform_indices = @transform_4, window_bounds = array<i64: 3, 128, 128>}, {pipeline_mode = #tpu.pipeline_mode<synchronous>, transform_indices = @transform_5, window_bounds = array<i64: 1, 128>}, {pipeline_mode = #tpu.pipeline_mode<synchronous>, transform_indices = @transform_6, window_bounds = array<i64: 3, 128, 128>}, {pipeline_mode = #tpu.pipeline_mode<synchronous>, transform_indices = @transform_7, window_bounds = array<i64: 1, 128>}, {transform_indices = @transform_8, window_bounds = array<i64: 32, 128>}]} {
    %c0 = arith.constant 0 : index
    %c0_0 = arith.constant 0 : index
    %0 = vector.load %arg1[%c0, %c0_0] : memref<32x64xf32, #tpu.memory_space<vmem>>, vector<32x64xf32>
    %c0_1 = arith.constant 0 : index
    %c0_2 = arith.constant 0 : index
    %c0_3 = arith.constant 0 : index
    %1 = vector.load %arg2[%c0_1, %c0_2, %c0_3] : memref<2x32x32xf32, #tpu.memory_space<vmem>>, vector<1x32x32xf32>
    %2 = vector.shape_cast %1 : vector<1x32x32xf32> to vector<32x32xf32>
    %c1 = arith.constant 1 : index
    %c0_4 = arith.constant 0 : index
    %c0_5 = arith.constant 0 : index
    %3 = vector.load %arg2[%c1, %c0_4, %c0_5] : memref<2x32x32xf32, #tpu.memory_space<vmem>>, vector<1x32x32xf32>
    %4 = vector.shape_cast %3 : vector<1x32x32xf32> to vector<32x32xf32>
    %c0_6 = arith.constant 0 : index
    %c0_7 = arith.constant 0 : index
    %5 = vector.load %arg3[%c0_6, %c0_7] : memref<64x128xf32, #tpu.memory_space<vmem>>, vector<64x128xf32>
    %cst = arith.constant dense<0.000000e+00> : vector<32x128xf32>
    %6 = tpu.matmul %0, %5, %cst {dimension_numbers = #tpu.dot_dimension_numbers<[1], [0], [0], [1], [0, 0, 1, 1], [], []>} : vector<32x64xf32>, vector<64x128xf32>, vector<32x128xf32> -> vector<32x128xf32>
    %c0_8 = arith.constant 0 : index
    %c0_9 = arith.constant 0 : index
    %7 = vector.load %arg4[%c0_8, %c0_9] : memref<1x128xf32, #tpu.memory_space<vmem>>, vector<1x128xf32>
    %8 = vector.broadcast %7 : vector<1x128xf32> to vector<32x128xf32>
    %9 = arith.addf %6, %8 : vector<32x128xf32>
    %c0_10 = arith.constant 0 : index
    %c0_11 = arith.constant 0 : index
    %c0_12 = arith.constant 0 : index
    %10 = vector.load %arg5[%c0_10, %c0_11, %c0_12] : memref<3x128x128xf32, #tpu.memory_space<vmem>>, vector<1x128x128xf32>
    %11 = vector.shape_cast %10 : vector<1x128x128xf32> to vector<128x128xf32>
    %c1_13 = arith.constant 1 : index
    %c0_14 = arith.constant 0 : index
    %c0_15 = arith.constant 0 : index
    %12 = vector.load %arg5[%c1_13, %c0_14, %c0_15] : memref<3x128x128xf32, #tpu.memory_space<vmem>>, vector<1x128x128xf32>
    %13 = vector.shape_cast %12 : vector<1x128x128xf32> to vector<128x128xf32>
    %c2 = arith.constant 2 : index
    %c0_16 = arith.constant 0 : index
    %c0_17 = arith.constant 0 : index
    %14 = vector.load %arg5[%c2, %c0_16, %c0_17] : memref<3x128x128xf32, #tpu.memory_space<vmem>>, vector<1x128x128xf32>
    %15 = vector.shape_cast %14 : vector<1x128x128xf32> to vector<128x128xf32>
    %c0_18 = arith.constant 0 : index
    %c0_19 = arith.constant 0 : index
    %16 = vector.load %arg6[%c0_18, %c0_19] : memref<1x128xf32, #tpu.memory_space<vmem>>, vector<1x128xf32>
    %cst_20 = arith.constant dense<0.000000e+00> : vector<32x128xf32>
    %17 = tpu.matmul %2, %9, %cst_20 {dimension_numbers = #tpu.dot_dimension_numbers<[1], [0], [0], [1], [0, 0, 1, 1], [], []>} : vector<32x32xf32>, vector<32x128xf32>, vector<32x128xf32> -> vector<32x128xf32>
    %cst_21 = arith.constant dense<0.000000e+00> : vector<32x128xf32>
    %18 = tpu.matmul %4, %9, %cst_21 {dimension_numbers = #tpu.dot_dimension_numbers<[1], [0], [0], [1], [0, 0, 1, 1], [], []>} : vector<32x32xf32>, vector<32x128xf32>, vector<32x128xf32> -> vector<32x128xf32>
    %cst_22 = arith.constant dense<0.000000e+00> : vector<32x128xf32>
    %19 = tpu.matmul %17, %11, %cst_22 {dimension_numbers = #tpu.dot_dimension_numbers<[1], [0], [0], [1], [0, 0, 1, 1], [], []>} : vector<32x128xf32>, vector<128x128xf32>, vector<32x128xf32> -> vector<32x128xf32>
    %cst_23 = arith.constant dense<0.000000e+00> : vector<32x128xf32>
    %20 = tpu.matmul %9, %13, %cst_23 {dimension_numbers = #tpu.dot_dimension_numbers<[1], [0], [0], [1], [0, 0, 1, 1], [], []>} : vector<32x128xf32>, vector<128x128xf32>, vector<32x128xf32> -> vector<32x128xf32>
    %21 = arith.addf %19, %20 : vector<32x128xf32>
    %cst_24 = arith.constant dense<0.000000e+00> : vector<32x128xf32>
    %22 = tpu.matmul %18, %15, %cst_24 {dimension_numbers = #tpu.dot_dimension_numbers<[1], [0], [0], [1], [0, 0, 1, 1], [], []>} : vector<32x128xf32>, vector<128x128xf32>, vector<32x128xf32> -> vector<32x128xf32>
    %23 = arith.addf %21, %22 : vector<32x128xf32>
    %24 = vector.broadcast %16 : vector<1x128xf32> to vector<32x128xf32>
    %25 = arith.addf %23, %24 : vector<32x128xf32>
    %cst_25 = arith.constant 0.000000e+00 : f32
    %26 = vector.broadcast %cst_25 : f32 to vector<32x128xf32>
    %27 = arith.maximumf %25, %26 : vector<32x128xf32>
    %28 = arith.addf %9, %27 : vector<32x128xf32>
    %cst_26 = arith.constant dense<0.000000e+00> : vector<32x128xf32>
    %29 = tpu.matmul %2, %28, %cst_26 {dimension_numbers = #tpu.dot_dimension_numbers<[1], [0], [0], [1], [0, 0, 1, 1], [], []>} : vector<32x32xf32>, vector<32x128xf32>, vector<32x128xf32> -> vector<32x128xf32>
    %cst_27 = arith.constant dense<0.000000e+00> : vector<32x128xf32>
    %30 = tpu.matmul %4, %28, %cst_27 {dimension_numbers = #tpu.dot_dimension_numbers<[1], [0], [0], [1], [0, 0, 1, 1], [], []>} : vector<32x32xf32>, vector<32x128xf32>, vector<32x128xf32> -> vector<32x128xf32>
    %cst_28 = arith.constant dense<0.000000e+00> : vector<32x128xf32>
    %31 = tpu.matmul %29, %11, %cst_28 {dimension_numbers = #tpu.dot_dimension_numbers<[1], [0], [0], [1], [0, 0, 1, 1], [], []>} : vector<32x128xf32>, vector<128x128xf32>, vector<32x128xf32> -> vector<32x128xf32>
    %cst_29 = arith.constant dense<0.000000e+00> : vector<32x128xf32>
    %32 = tpu.matmul %28, %13, %cst_29 {dimension_numbers = #tpu.dot_dimension_numbers<[1], [0], [0], [1], [0, 0, 1, 1], [], []>} : vector<32x128xf32>, vector<128x128xf32>, vector<32x128xf32> -> vector<32x128xf32>
    %33 = arith.addf %31, %32 : vector<32x128xf32>
    %cst_30 = arith.constant dense<0.000000e+00> : vector<32x128xf32>
    %34 = tpu.matmul %30, %15, %cst_30 {dimension_numbers = #tpu.dot_dimension_numbers<[1], [0], [0], [1], [0, 0, 1, 1], [], []>} : vector<32x128xf32>, vector<128x128xf32>, vector<32x128xf32> -> vector<32x128xf32>
    %35 = arith.addf %33, %34 : vector<32x128xf32>
    %36 = vector.broadcast %16 : vector<1x128xf32> to vector<32x128xf32>
    %37 = arith.addf %35, %36 : vector<32x128xf32>
    %cst_31 = arith.constant 0.000000e+00 : f32
    %38 = vector.broadcast %cst_31 : f32 to vector<32x128xf32>
    %39 = arith.maximumf %37, %38 : vector<32x128xf32>
    %40 = arith.addf %9, %39 : vector<32x128xf32>
    %cst_32 = arith.constant dense<0.000000e+00> : vector<32x128xf32>
    %41 = tpu.matmul %2, %40, %cst_32 {dimension_numbers = #tpu.dot_dimension_numbers<[1], [0], [0], [1], [0, 0, 1, 1], [], []>} : vector<32x32xf32>, vector<32x128xf32>, vector<32x128xf32> -> vector<32x128xf32>
    %cst_33 = arith.constant dense<0.000000e+00> : vector<32x128xf32>
    %42 = tpu.matmul %4, %40, %cst_33 {dimension_numbers = #tpu.dot_dimension_numbers<[1], [0], [0], [1], [0, 0, 1, 1], [], []>} : vector<32x32xf32>, vector<32x128xf32>, vector<32x128xf32> -> vector<32x128xf32>
    %cst_34 = arith.constant dense<0.000000e+00> : vector<32x128xf32>
    %43 = tpu.matmul %41, %11, %cst_34 {dimension_numbers = #tpu.dot_dimension_numbers<[1], [0], [0], [1], [0, 0, 1, 1], [], []>} : vector<32x128xf32>, vector<128x128xf32>, vector<32x128xf32> -> vector<32x128xf32>
    %cst_35 = arith.constant dense<0.000000e+00> : vector<32x128xf32>
    %44 = tpu.matmul %40, %13, %cst_35 {dimension_numbers = #tpu.dot_dimension_numbers<[1], [0], [0], [1], [0, 0, 1, 1], [], []>} : vector<32x128xf32>, vector<128x128xf32>, vector<32x128xf32> -> vector<32x128xf32>
    %45 = arith.addf %43, %44 : vector<32x128xf32>
    %cst_36 = arith.constant dense<0.000000e+00> : vector<32x128xf32>
    %46 = tpu.matmul %42, %15, %cst_36 {dimension_numbers = #tpu.dot_dimension_numbers<[1], [0], [0], [1], [0, 0, 1, 1], [], []>} : vector<32x128xf32>, vector<128x128xf32>, vector<32x128xf32> -> vector<32x128xf32>
    %47 = arith.addf %45, %46 : vector<32x128xf32>
    %48 = vector.broadcast %16 : vector<1x128xf32> to vector<32x128xf32>
    %49 = arith.addf %47, %48 : vector<32x128xf32>
    %cst_37 = arith.constant 0.000000e+00 : f32
    %50 = vector.broadcast %cst_37 : f32 to vector<32x128xf32>
    %51 = arith.maximumf %49, %50 : vector<32x128xf32>
    %c0_38 = arith.constant 0 : index
    %c0_39 = arith.constant 0 : index
    %c0_40 = arith.constant 0 : index
    %52 = vector.load %arg7[%c0_38, %c0_39, %c0_40] : memref<3x128x128xf32, #tpu.memory_space<vmem>>, vector<1x128x128xf32>
    %53 = vector.shape_cast %52 : vector<1x128x128xf32> to vector<128x128xf32>
    %c1_41 = arith.constant 1 : index
    %c0_42 = arith.constant 0 : index
    %c0_43 = arith.constant 0 : index
    %54 = vector.load %arg7[%c1_41, %c0_42, %c0_43] : memref<3x128x128xf32, #tpu.memory_space<vmem>>, vector<1x128x128xf32>
    %55 = vector.shape_cast %54 : vector<1x128x128xf32> to vector<128x128xf32>
    %c2_44 = arith.constant 2 : index
    %c0_45 = arith.constant 0 : index
    %c0_46 = arith.constant 0 : index
    %56 = vector.load %arg7[%c2_44, %c0_45, %c0_46] : memref<3x128x128xf32, #tpu.memory_space<vmem>>, vector<1x128x128xf32>
    %57 = vector.shape_cast %56 : vector<1x128x128xf32> to vector<128x128xf32>
    %c0_47 = arith.constant 0 : index
    %c0_48 = arith.constant 0 : index
    %58 = vector.load %arg8[%c0_47, %c0_48] : memref<1x128xf32, #tpu.memory_space<vmem>>, vector<1x128xf32>
    %cst_49 = arith.constant dense<0.000000e+00> : vector<32x128xf32>
    %59 = tpu.matmul %2, %51, %cst_49 {dimension_numbers = #tpu.dot_dimension_numbers<[1], [0], [0], [1], [0, 0, 1, 1], [], []>} : vector<32x32xf32>, vector<32x128xf32>, vector<32x128xf32> -> vector<32x128xf32>
    %cst_50 = arith.constant dense<0.000000e+00> : vector<32x128xf32>
    %60 = tpu.matmul %4, %51, %cst_50 {dimension_numbers = #tpu.dot_dimension_numbers<[1], [0], [0], [1], [0, 0, 1, 1], [], []>} : vector<32x32xf32>, vector<32x128xf32>, vector<32x128xf32> -> vector<32x128xf32>
    %cst_51 = arith.constant dense<0.000000e+00> : vector<32x128xf32>
    %61 = tpu.matmul %59, %53, %cst_51 {dimension_numbers = #tpu.dot_dimension_numbers<[1], [0], [0], [1], [0, 0, 1, 1], [], []>} : vector<32x128xf32>, vector<128x128xf32>, vector<32x128xf32> -> vector<32x128xf32>
    %cst_52 = arith.constant dense<0.000000e+00> : vector<32x128xf32>
    %62 = tpu.matmul %51, %55, %cst_52 {dimension_numbers = #tpu.dot_dimension_numbers<[1], [0], [0], [1], [0, 0, 1, 1], [], []>} : vector<32x128xf32>, vector<128x128xf32>, vector<32x128xf32> -> vector<32x128xf32>
    %63 = arith.addf %61, %62 : vector<32x128xf32>
    %cst_53 = arith.constant dense<0.000000e+00> : vector<32x128xf32>
    %64 = tpu.matmul %60, %57, %cst_53 {dimension_numbers = #tpu.dot_dimension_numbers<[1], [0], [0], [1], [0, 0, 1, 1], [], []>} : vector<32x128xf32>, vector<128x128xf32>, vector<32x128xf32> -> vector<32x128xf32>
    %65 = arith.addf %63, %64 : vector<32x128xf32>
    %66 = vector.broadcast %58 : vector<1x128xf32> to vector<32x128xf32>
    %67 = arith.addf %65, %66 : vector<32x128xf32>
    %cst_54 = arith.constant 0.000000e+00 : f32
    %68 = vector.broadcast %cst_54 : f32 to vector<32x128xf32>
    %69 = arith.maximumf %67, %68 : vector<32x128xf32>
    %70 = arith.addf %51, %69 : vector<32x128xf32>
    %cst_55 = arith.constant dense<0.000000e+00> : vector<32x128xf32>
    %71 = tpu.matmul %2, %70, %cst_55 {dimension_numbers = #tpu.dot_dimension_numbers<[1], [0], [0], [1], [0, 0, 1, 1], [], []>} : vector<32x32xf32>, vector<32x128xf32>, vector<32x128xf32> -> vector<32x128xf32>
    %cst_56 = arith.constant dense<0.000000e+00> : vector<32x128xf32>
    %72 = tpu.matmul %4, %70, %cst_56 {dimension_numbers = #tpu.dot_dimension_numbers<[1], [0], [0], [1], [0, 0, 1, 1], [], []>} : vector<32x32xf32>, vector<32x128xf32>, vector<32x128xf32> -> vector<32x128xf32>
    %cst_57 = arith.constant dense<0.000000e+00> : vector<32x128xf32>
    %73 = tpu.matmul %71, %53, %cst_57 {dimension_numbers = #tpu.dot_dimension_numbers<[1], [0], [0], [1], [0, 0, 1, 1], [], []>} : vector<32x128xf32>, vector<128x128xf32>, vector<32x128xf32> -> vector<32x128xf32>
    %cst_58 = arith.constant dense<0.000000e+00> : vector<32x128xf32>
    %74 = tpu.matmul %70, %55, %cst_58 {dimension_numbers = #tpu.dot_dimension_numbers<[1], [0], [0], [1], [0, 0, 1, 1], [], []>} : vector<32x128xf32>, vector<128x128xf32>, vector<32x128xf32> -> vector<32x128xf32>
    %75 = arith.addf %73, %74 : vector<32x128xf32>
    %cst_59 = arith.constant dense<0.000000e+00> : vector<32x128xf32>
    %76 = tpu.matmul %72, %57, %cst_59 {dimension_numbers = #tpu.dot_dimension_numbers<[1], [0], [0], [1], [0, 0, 1, 1], [], []>} : vector<32x128xf32>, vector<128x128xf32>, vector<32x128xf32> -> vector<32x128xf32>
    %77 = arith.addf %75, %76 : vector<32x128xf32>
    %78 = vector.broadcast %58 : vector<1x128xf32> to vector<32x128xf32>
    %79 = arith.addf %77, %78 : vector<32x128xf32>
    %cst_60 = arith.constant 0.000000e+00 : f32
    %80 = vector.broadcast %cst_60 : f32 to vector<32x128xf32>
    %81 = arith.maximumf %79, %80 : vector<32x128xf32>
    %82 = arith.addf %51, %81 : vector<32x128xf32>
    %cst_61 = arith.constant dense<0.000000e+00> : vector<32x128xf32>
    %83 = tpu.matmul %2, %82, %cst_61 {dimension_numbers = #tpu.dot_dimension_numbers<[1], [0], [0], [1], [0, 0, 1, 1], [], []>} : vector<32x32xf32>, vector<32x128xf32>, vector<32x128xf32> -> vector<32x128xf32>
    %cst_62 = arith.constant dense<0.000000e+00> : vector<32x128xf32>
    %84 = tpu.matmul %4, %82, %cst_62 {dimension_numbers = #tpu.dot_dimension_numbers<[1], [0], [0], [1], [0, 0, 1, 1], [], []>} : vector<32x32xf32>, vector<32x128xf32>, vector<32x128xf32> -> vector<32x128xf32>
    %cst_63 = arith.constant dense<0.000000e+00> : vector<32x128xf32>
    %85 = tpu.matmul %83, %53, %cst_63 {dimension_numbers = #tpu.dot_dimension_numbers<[1], [0], [0], [1], [0, 0, 1, 1], [], []>} : vector<32x128xf32>, vector<128x128xf32>, vector<32x128xf32> -> vector<32x128xf32>
    %cst_64 = arith.constant dense<0.000000e+00> : vector<32x128xf32>
    %86 = tpu.matmul %82, %55, %cst_64 {dimension_numbers = #tpu.dot_dimension_numbers<[1], [0], [0], [1], [0, 0, 1, 1], [], []>} : vector<32x128xf32>, vector<128x128xf32>, vector<32x128xf32> -> vector<32x128xf32>
    %87 = arith.addf %85, %86 : vector<32x128xf32>
    %cst_65 = arith.constant dense<0.000000e+00> : vector<32x128xf32>
    %88 = tpu.matmul %84, %57, %cst_65 {dimension_numbers = #tpu.dot_dimension_numbers<[1], [0], [0], [1], [0, 0, 1, 1], [], []>} : vector<32x128xf32>, vector<128x128xf32>, vector<32x128xf32> -> vector<32x128xf32>
    %89 = arith.addf %87, %88 : vector<32x128xf32>
    %90 = vector.broadcast %58 : vector<1x128xf32> to vector<32x128xf32>
    %91 = arith.addf %89, %90 : vector<32x128xf32>
    %cst_66 = arith.constant 0.000000e+00 : f32
    %92 = vector.broadcast %cst_66 : f32 to vector<32x128xf32>
    %93 = arith.maximumf %91, %92 : vector<32x128xf32>
    %94 = arith.addf %9, %93 : vector<32x128xf32>
    %c0_67 = arith.constant 0 : index
    %c0_68 = arith.constant 0 : index
    %95 = vector.load %arg9[%c0_67, %c0_68] : memref<32x128xf32, #tpu.memory_space<vmem>>, vector<32x128xf32>
    tpu.vector_store %arg9[%c0_67, %c0_68], %94 {strides = array<i32>} : memref<32x128xf32, #tpu.memory_space<vmem>>, vector<32x128xf32>,
    return
  }
  func.func @transform_0(%arg0: i32) -> (i32, i32) {
    %c0_i32 = arith.constant 0 : i32
    %c0_i32_0 = arith.constant 0 : i32
    return %arg0, %c0_i32 : i32, i32
  }
  func.func @transform_1(%arg0: i32) -> (i32, i32, i32) {
    %c0_i32 = arith.constant 0 : i32
    %c0_i32_0 = arith.constant 0 : i32
    %c0_i32_1 = arith.constant 0 : i32
    %c0_i32_2 = arith.constant 0 : i32
    return %c0_i32, %c0_i32_0, %c0_i32_1 : i32, i32, i32
  }
  func.func @transform_2(%arg0: i32) -> (i32, i32) {
    %c0_i32 = arith.constant 0 : i32
    %c0_i32_0 = arith.constant 0 : i32
    %c0_i32_1 = arith.constant 0 : i32
    return %c0_i32, %c0_i32_0 : i32, i32
  }
  func.func @transform_3(%arg0: i32) -> (i32, i32) {
    %c0_i32 = arith.constant 0 : i32
    %c0_i32_0 = arith.constant 0 : i32
    %c0_i32_1 = arith.constant 0 : i32
    return %c0_i32, %c0_i32_0 : i32, i32
  }
  func.func @transform_4(%arg0: i32) -> (i32, i32, i32) {
    %c0_i32 = arith.constant 0 : i32
    %c0_i32_0 = arith.constant 0 : i32
    %c0_i32_1 = arith.constant 0 : i32
    %c0_i32_2 = arith.constant 0 : i32
    return %c0_i32, %c0_i32_0, %c0_i32_1 : i32, i32, i32
  }
  func.func @transform_5(%arg0: i32) -> (i32, i32) {
    %c0_i32 = arith.constant 0 : i32
    %c0_i32_0 = arith.constant 0 : i32
    %c0_i32_1 = arith.constant 0 : i32
    return %c0_i32, %c0_i32_0 : i32, i32
  }
  func.func @transform_6(%arg0: i32) -> (i32, i32, i32) {
    %c0_i32 = arith.constant 0 : i32
    %c0_i32_0 = arith.constant 0 : i32
    %c0_i32_1 = arith.constant 0 : i32
    %c0_i32_2 = arith.constant 0 : i32
    return %c0_i32, %c0_i32_0, %c0_i32_1 : i32, i32, i32
  }
  func.func @transform_7(%arg0: i32) -> (i32, i32) {
    %c0_i32 = arith.constant 0 : i32
    %c0_i32_0 = arith.constant 0 : i32
    %c0_i32_1 = arith.constant 0 : i32
    return %c0_i32, %c0_i32_0 : i32, i32
  }
  func.func @transform_8(%arg0: i32) -> (i32, i32) {
    %c0_i32 = arith.constant 0 : i32
    %c0_i32_0 = arith.constant 0 : i32
    return %arg0, %c0_i32 : i32, i32
  }
}

</mosaic_0001>

<bundles_post_ra>
// kernel: tile.18
= control target key start
LH: loop header
LB: loop body
LE: loop exit
PB: predicated region body
PF: predicated region fallthrough
CT: control target
= control target key end

     0   :  { %s28_s0 = inlined_call_operand.vmem [shape: f32[8], index: 0, kind: input, shape index: {}]   ;;  %s29_s1 = inlined_call_operand.vmem [shape: f32[16,8], index: 1, kind: output, shape index: {}]  }
   0x1   :  { %v4_v0 = vld [vmem:[%s28_s0] ss:$0 sm:$0xff] }
   0x2   :  { %5 = vst [vmem:[%s29_s1] sm:$0xff] %v4_v0  ;;  %8 = vst [vmem:[%s29_s1 + $0x8] sm:$0xff] %v4_v0 }

// kernel: tile.19
= control target key start
LH: loop header
LB: loop body
LE: loop exit
PB: predicated region body
PF: predicated region fallthrough
CT: control target
= control target key end

     0   :  { %s131_s10 = smov 120   ;;  %s132_s11 = smov 104   ;;  %vm3_vm0 = vcmask 64512   ;;  %vm9_vm1 = vcmask 1048512   ;;  %vm15_vm2 = vcmask 982912   ;;  %vm21_vm3 = vcmask 917312   ;;  %s207_s0 = inlined_call_operand.vmem [shape: f32[16,8], index: 0, kind: input, shape index: {}]   ;;  %s208_s1 = inlined_call_operand.vmem [shape: f32[1,128], index: 1, kind: output, shape index: {}]  }
   0x1   :  { %v101_v0 = vld [vmem:[%s207_s0 + $0xf] sm:$0x1]   ;;  %v103_v1 = vld [vmem:[%s207_s0 + $0xd] sm:$0x1]   ;;  %v102_v2 = vld [vmem:[%s207_s0 + $0xe] sm:$0x1]  }
   0x2   :  { %7 = vrot.lane.b32.xlu0 %v101_v0, %s131_s10  ;;  %19 = vrot.lane.b32.xlu1 %v103_v1, %s132_s11  ;;  %v104_v3 = vld [vmem:[%s207_s0 + $0xc] sm:$0x1]   ;;  %s133_s16 = smov 112   ;;  %s134_s17 = smov 96   ;;  %v105_v4 = vld [vmem:[%s207_s0 + $0xb] sm:$0x1]  }
   0x3   :  { %v106_v5 = vld [vmem:[%s207_s0 + $0xa] sm:$0x1]   ;;  %v2_v6 = vld [vmem:[%s207_s0] sm:$0x1]   ;;  %s135_s24 = smov 88   ;;  %s136_s25 = smov 80  }
   0x4   :  { %4 = vst.msk [vmem:[#allocation0] sm:$0x1] %vm3_vm0, %v2_v6   ;;  %v107_v7 = vld [vmem:[%s207_s0 + $0x9] sm:$0x1]   ;;  %v108_v8 = vld [vmem:[%s207_s0 + $0x8] sm:$0x1]  }
   0x5   :  { %s137_s30 = smov 72   ;;  %s138_s2 = smov 64   ;;  %v109_v9 = vld [vmem:[%s207_s0 + $0x7] sm:$0x1]   ;;  %v110_v10 = vld [vmem:[%s207_s0 + $0x6] sm:$0x1]  }
   0x6   :  { %13 = vrot.lane.b32.xlu0 %v102_v2, %s133_s16  ;;  %25 = vrot.lane.b32.xlu1 %v104_v3, %s134_s17  ;;  %s139_s7 = smov 56   ;;  %s140_s8 = smov 48   ;;  %v111_v11 = vld [vmem:[%s207_s0 + $0x5] sm:$0x1]   ;;  %v112_v12 = vld [vmem:[%s207_s0 + $0x4] sm:$0x1]  }
   0x7   :  { %s141_s13 = smov 40   ;;  %s142_s14 = smov 32   ;;  %v113_v13 = vld [vmem:[%s207_s0 + $0x3] sm:$0x1]   ;;  %v114_v14 = vld [vmem:[%s207_s0 + $0x2] sm:$0x1]  }
   0x8   :  { %s143_s19 = smov 24   ;;  %s144_s20 = smov 16   ;;  %v115_v15 = vld [vmem:[%s207_s0 + $0x1] sm:$0x1]   ;;  %vm27_vm4 = vcmask 851712   ;;  %vm33_vm5 = vcmask 786112  }
   0x9   :  { %s145_s0 = smov 8   ;;  %vm39_vm6 = vcmask 720512   ;;  %vm45_vm7 = vcmask 654912   ;;  %vm51_vm8 = vcmask 589312   ;;  %vm57_vm9 = vcmask 523712  }
   0xa   :  { %31 = vrot.lane.b32.xlu0 %v105_v4, %s135_s24  ;;  %37 = vrot.lane.b32.xlu1 %v106_v5, %s136_s25  ;;  %vm63_vm10 = vcmask 458112   ;;  %vm69_vm11 = vcmask 392512   ;;  %vm75_vm12 = vcmask 326912   ;;  %vm81_vm13 = vcmask 261312  }
   0xb   :  { %vm87_vm14 = vcmask 195712   ;;  %vm93_vm15 = vcmask 130112  }
   0xe   :  { %43 = vrot.lane.b32.xlu0 %v107_v7, %s137_s30  ;;  %49 = vrot.lane.b32.xlu1 %v108_v8, %s138_s2 }
  0x12   :  { %55 = vrot.lane.b32.xlu0 %v109_v9, %s139_s7  ;;  %61 = vrot.lane.b32.xlu1 %v110_v10, %s140_s8 }
  0x16   :  { %67 = vrot.lane.b32.xlu0 %v111_v11, %s141_s13  ;;  %73 = vrot.lane.b32.xlu1 %v112_v12, %s142_s14 }
  0x1a   :  { %79 = vrot.lane.b32.xlu0 %v113_v13, %s143_s19  ;;  %85 = vrot.lane.b32.xlu1 %v114_v14, %s144_s20 }
  0x1e   :  { %91 = vrot.lane.b32.xlu0 %v115_v15, %s145_s0 }
  0x74   :  { %v8_v16 = vpop.permute.xlu0 %7   ;;  %v20_v17 = vpop.permute.xlu1 %19  }
  0x75   :  { %10 = vst.msk [vmem:[#allocation0] sm:$0x1] %vm9_vm1, %v8_v16  }
  0x78   :  { %v14_v18 = vpop.permute.xlu0 %13   ;;  %v26_v19 = vpop.permute.xlu1 %25  }
  0x79   :  { %16 = vst.msk [vmem:[#allocation0] sm:$0x1] %vm15_vm2, %v14_v18  }
  0x7a   :  { %22 = vst.msk [vmem:[#allocation0] sm:$0x1] %vm21_vm3, %v20_v17  }
  0x7b   :  { %28 = vst.msk [vmem:[#allocation0] sm:$0x1] %vm27_vm4, %v26_v19  }
  0x7c   :  { %v32_v20 = vpop.permute.xlu0 %31   ;;  %v38_v21 = vpop.permute.xlu1 %37  }
  0x7d   :  { %34 = vst.msk [vmem:[#allocation0] sm:$0x1] %vm33_vm5, %v32_v20  }
  0x7e   :  { %40 = vst.msk [vmem:[#allocation0] sm:$0x1] %vm39_vm6, %v38_v21  }
  0x80   :  { %v44_v22 = vpop.permute.xlu0 %43   ;;  %v50_v23 = vpop.permute.xlu1 %49  }
  0x81   :  { %46 = vst.msk [vmem:[#allocation0] sm:$0x1] %vm45_vm7, %v44_v22  }
  0x82   :  { %52 = vst.msk [vmem:[#allocation0] sm:$0x1] %vm51_vm8, %v50_v23  }
  0x84   :  { %v56_v24 = vpop.permute.xlu0 %55   ;;  %v62_v25 = vpop.permute.xlu1 %61  }
  0x85   :  { %58 = vst.msk [vmem:[#allocation0] sm:$0x1] %vm57_vm9, %v56_v24  }
  0x86   :  { %64 = vst.msk [vmem:[#allocation0] sm:$0x1] %vm63_vm10, %v62_v25  }
  0x88   :  { %v68_v26 = vpop.permute.xlu0 %67   ;;  %v74_v27 = vpop.permute.xlu1 %73  }
  0x89   :  { %70 = vst.msk [vmem:[#allocation0] sm:$0x1] %vm69_vm11, %v68_v26  }
  0x8a   :  { %76 = vst.msk [vmem:[#allocation0] sm:$0x1] %vm75_vm12, %v74_v27  }
  0x8c   :  { %v80_v28 = vpop.permute.xlu0 %79   ;;  %v86_v29 = vpop.permute.xlu1 %85  }
  0x8d   :  { %82 = vst.msk [vmem:[#allocation0] sm:$0x1] %vm81_vm13, %v80_v28  }
  0x8e   :  { %88 = vst.msk [vmem:[#allocation0] sm:$0x1] %vm87_vm14, %v86_v29  }
  0x90   :  { %v92_v30 = vpop.permute.xlu0 %91  }
  0x91   :  { %94 = vst.msk [vmem:[#allocation0] sm:$0x1] %vm93_vm15, %v92_v30  }
  0x98   :  { %v98_v31 = vld [vmem:[#allocation0] sm:$0x1] }
  0x99   :  { %100 = vst [vmem:[%s208_s1] sm:$0x1] %v98_v31 }

// kernel: rrcnn_block.1
= control target key start
LH: loop header
LB: loop body
LE: loop exit
PB: predicated region body
PF: predicated region fallthrough
CT: control target
= control target key end

     0   :  { %vm57_vm0 = vcmask 523264   ;;  %vm206_vm1 = vcmask 261120   ;;  %s6184_s2 = inlined_call_operand.vmem [shape: f32[64,128], index: 2, kind: input, shape index: {}]   ;;  %s6185_s0 = inlined_call_operand.vmem [shape: f32[32,64], index: 0, kind: input, shape index: {}]   ;;  %s6186_s1 = inlined_call_operand.vmem [shape: f32[2,32,32], index: 1, kind: input, shape index: {}]   ;;  %s6187_s3 = inlined_call_operand.vmem [shape: f32[1,128], index: 3, kind: input, shape index: {}]   ;;  %s6188_s4 = inlined_call_operand.vmem [shape: f32[3,128,128], index: 4, kind: input, shape index: {}]   ;;  %s6189_s5 = inlined_call_operand.vmem [shape: f32[1,128], index: 5, kind: input, shape index: {}]   ;;  %s6190_s6 = inlined_call_operand.vmem [shape: f32[3,128,128], index: 6, kind: input, shape index: {}]   ;;  %s6191_s7 = inlined_call_operand.vmem [shape: f32[1,128], index: 7, kind: input, shape index: {}]   ;;  %s6192_s8 = inlined_call_operand.vmem [shape: f32[32,128], index: 8, kind: output, shape index: {}]  }
   0x1   :  { %v42_v0 = vld [vmem:[%s6184_s2] sm:$0xff]  ;;  %v43_v1 = vld [vmem:[%s6184_s2 + $0x8] sm:$0xff]  ;;  %v44_v2 = vld [vmem:[%s6184_s2 + $0x10] sm:$0xff] }
   0x2   :  { %v4409_v3 = vpack.c.bf16 %v43_v1, %v42_v0  ;;  %v45_v4 = vld [vmem:[%s6184_s2 + $0x18] sm:$0xff]  ;;  %v46_v6 = vld [vmem:[%s6184_s2 + $0x20] sm:$0xff]  ;;  %v47_v7 = vld [vmem:[%s6184_s2 + $0x28] sm:$0xff] }
   0x3   :  { %v4413_v5 = vpack.c.bf16 %v45_v4, %v44_v2  ;;  %v29_v8 = vld [vmem:[%s6185_s0] sm:$0xff]  ;;  %v4417_v9 = vpack.c.bf16 %v47_v7, %v46_v6  ;;  %v48_v10 = vld [vmem:[%s6184_s2 + $0x30] sm:$0xff]  ;;  %v49_v11 = vld [vmem:[%s6184_s2 + $0x38] sm:$0xff] }
   0x4   :  { %4410 = vmatprep.subr.bf16.mxu0 %v4409_v3  ;;  %3551 = vmatprep.mubr.msk.f32.mxu0 %vm57_vm0, %v29_v8  ;;  %v4421_v12 = vpack.c.bf16 %v49_v11, %v48_v10  ;;  %v30_v13 = vld [vmem:[%s6185_s0 + $0x8] sm:$0xff]  ;;  %v31_v14 = vld [vmem:[%s6185_s0 + $0x10] sm:$0xff]  ;;  %v32_v15 = vld [vmem:[%s6185_s0 + $0x18] sm:$0xff] }
   0x5   :  { %4412 = vmatpush3.bf16.msra.mxu0 %v4409_v3  ;;  %v5241_v16 = vld [vmem:[%s6186_s1] sm:$0xff]  ;;  %v2954_v28 = vld [vmem:[%s6188_s4 + $0x88] sm:$0xff]  ;;  %v2955_v32 = vld [vmem:[%s6188_s4 + $0x90] sm:$0xff] }
   0x6   :  { %4414 = vmatprep.subr.bf16.mxu0 %v4413_v5  ;;  %v5248_v17 = vld [vmem:[%s6186_s1 + $0x20] sm:$0xff]  ;;  %v2956_v33 = vld [vmem:[%s6188_s4 + $0x98] sm:$0xff]  ;;  %v5284_v34 = vld [vmem:[%s6186_s1 + $0x8] sm:$0xff] }
   0x7   :  { %3579 = vmatprep.mubr.msk.f32.mxu1 %vm206_vm1, %v5248_v17  ;;  %v2948_v18 = vld [vmem:[%s6187_s3] ss:$0 sm:$0xff]  ;;  %v5289_v35 = vld [vmem:[%s6186_s1 + $0x28] sm:$0xff]  ;;  %v5295_v36 = vld [vmem:[%s6186_s1 + $0x10] sm:$0xff]  ;;  %v5297_v37 = vpack.c.bf16 %v2956_v33, %v2955_v32 }
   0x8   :  { %v2953_v27 = vld [vmem:[%s6188_s4 + $0x80] sm:$0xff]  ;;  %v2958_v39 = vld [vmem:[%s6188_s4 + $0xa8] sm:$0xff]  ;;  %v5308_v40 = vld [vmem:[%s6186_s1 + $0x30] sm:$0xff] }
   0x9   :  { %4416 = vmatpush3.bf16.msra.mxu0 %v4413_v5  ;;  %v5273_v31 = vpack.c.bf16 %v2954_v28, %v2953_v27  ;;  %v2957_v38 = vld [vmem:[%s6188_s4 + $0xa0] sm:$0xff]  ;;  %v5320_v41 = vld [vmem:[%s6186_s1 + $0x18] sm:$0xff]  ;;  %v2959_v44 = vld [vmem:[%s6188_s4 + $0xb0] sm:$0xff] }
   0xa   :  { %4418 = vmatprep.subr.bf16.mxu0 %v4417_v9  ;;  %v5325_v42 = vld [vmem:[%s6186_s1 + $0x38] sm:$0xff]  ;;  %v5328_v43 = vpack.c.bf16 %v2958_v39, %v2957_v38  ;;  %v2961_v47 = vld [vmem:[%s6188_s4 + $0xc0] sm:$0xff]  ;;  %v2962_v48 = vld [vmem:[%s6188_s4 + $0xc8] sm:$0xff] }
   0xb   :  { %v2960_v45 = vld [vmem:[%s6188_s4 + $0xb8] sm:$0xff]  ;;  %v5357_v49 = vpack.c.bf16 %v2962_v48, %v2961_v47  ;;  %v2963_v50 = vld [vmem:[%s6188_s4 + $0xd0] sm:$0xff]  ;;  %v2965_v53 = vld [vmem:[%s6188_s4 + $0xe0] sm:$0xff] }
   0xc   :  { %v5345_v46 = vpack.c.bf16 %v2960_v45, %v2959_v44  ;;  %v2964_v51 = vld [vmem:[%s6188_s4 + $0xd8] sm:$0xff]  ;;  %v2966_v54 = vld [vmem:[%s6188_s4 + $0xe8] sm:$0xff]  ;;  %v2967_v56 = vld [vmem:[%s6188_s4 + $0xf0] sm:$0xff] }
   0xd   :  { %4420 = vmatpush3.bf16.msra.mxu0 %v4417_v9  ;;  %v5367_v52 = vpack.c.bf16 %v2964_v51, %v2963_v50  ;;  %v5377_v55 = vpack.c.bf16 %v2966_v54, %v2965_v53  ;;  %v2968_v57 = vld [vmem:[%s6188_s4 + $0xf8] sm:$0xff]  ;;  %v155_v59 = vld [vmem:[%s6188_s4] sm:$0xff]  ;;  %v156_v60 = vld [vmem:[%s6188_s4 + $0x8] sm:$0xff] }
   0xe   :  { %4422 = vmatprep.subr.bf16.mxu0 %v4421_v12  ;;  %v5387_v58 = vpack.c.bf16 %v2968_v57, %v2967_v56  ;;  %v5397_v61 = vpack.c.bf16 %v156_v60, %v155_v59  ;;  %v157_v62 = vld [vmem:[%s6188_s4 + $0x10] sm:$0xff]  ;;  %v158_v63 = vld [vmem:[%s6188_s4 + $0x18] sm:$0xff]  ;;  %v159_v1 = vld [vmem:[%s6188_s4 + $0x20] sm:$0xff] }
   0xf   :  { %v5407_v0 = vpack.c.bf16 %v158_v63, %v157_v62  ;;  %v160_v2 = vld [vmem:[%s6188_s4 + $0x28] sm:$0xff]  ;;  %v161_v4 = vld [vmem:[%s6188_s4 + $0x30] sm:$0xff]  ;;  %v162_v5 = vld [vmem:[%s6188_s4 + $0x38] sm:$0xff] }
  0x10   :  { %v5419_v3 = vpack.c.bf16 %v160_v2, %v159_v1  ;;  %v5430_v6 = vpack.c.bf16 %v162_v5, %v161_v4  ;;  %v163_v7 = vld [vmem:[%s6188_s4 + $0x40] sm:$0xff]  ;;  %v164_v8 = vld [vmem:[%s6188_s4 + $0x48] sm:$0xff]  ;;  %v165_v10 = vld [vmem:[%s6188_s4 + $0x50] sm:$0xff] }
  0x11   :  { %4424 = vmatpush3.bf16.msra.mxu0 %v4421_v12  ;;  %v5440_v9 = vpack.c.bf16 %v164_v8, %v163_v7  ;;  %v166_v11 = vld [vmem:[%s6188_s4 + $0x58] sm:$0xff]  ;;  %v2971_v27 = vld [vmem:[%s6188_s4 + $0x110] sm:$0xff]  ;;  %v2973_v44 = vld [vmem:[%s6188_s4 + $0x120] sm:$0xff] }
  0x12   :  { %v5450_v12 = vpack.c.bf16 %v166_v11, %v165_v10  ;;  %v2972_v28 = vld [vmem:[%s6188_s4 + $0x118] sm:$0xff]  ;;  %v2974_v45 = vld [vmem:[%s6188_s4 + $0x128] sm:$0xff]  ;;  %v2975_v54 = vld [vmem:[%s6188_s4 + $0x130] sm:$0xff] }
  0x13   :  { %v5490_v38 = vpack.c.bf16 %v2972_v28, %v2971_v27  ;;  %v5500_v50 = vpack.c.bf16 %v2974_v45, %v2973_v44  ;;  %v2976_v56 = vld [vmem:[%s6188_s4 + $0x138] sm:$0xff]  ;;  %v2977_v59 = vld [vmem:[%s6188_s4 + $0x140] sm:$0xff]  ;;  %v2978_v60 = vld [vmem:[%s6188_s4 + $0x148] sm:$0xff] }
  0x14   :  { %3552 = vmatmul.mubr.msk.f32.vlgmr.msra.gmra.mrb[0].mxu0 %vm57_vm0, %v30_v13  ;;  %v167_v13 = vld [vmem:[%s6188_s4 + $0x60] sm:$0xff]  ;;  %v5510_v57 = vpack.c.bf16 %v2976_v56, %v2975_v54  ;;  %v5520_v62 = vpack.c.bf16 %v2978_v60, %v2977_v59  ;;  %v2979_v63 = vld [vmem:[%s6188_s4 + $0x150] sm:$0xff]  ;;  %v2980_v1 = vld [vmem:[%s6188_s4 + $0x158] sm:$0xff] }
  0x15   :  { %3554 = vmatprep.mubr.msk.f32.mxu0 %vm57_vm0, %v31_v14  ;;  %v168_v14 = vld [vmem:[%s6188_s4 + $0x68] sm:$0xff]  ;;  %v5530_v2 = vpack.c.bf16 %v2980_v1, %v2979_v63  ;;  %v2981_v4 = vld [vmem:[%s6188_s4 + $0x160] sm:$0xff]  ;;  %v2983_v8 = vld [vmem:[%s6188_s4 + $0x170] sm:$0xff] }
  0x16   :  { %v2982_v5 = vld [vmem:[%s6188_s4 + $0x168] sm:$0xff]  ;;  %v2984_v10 = vld [vmem:[%s6188_s4 + $0x178] sm:$0xff] }
  0x17   :  { %v5540_v7 = vpack.c.bf16 %v2982_v5, %v2981_v4  ;;  %v5550_v11 = vpack.c.bf16 %v2984_v10, %v2983_v8 }
  0x18   :  { %3555 = vmatmul.mubr.msk.f32.gmra.mrb[2].mxu0 %vm57_vm0, %v32_v15  ;;  %v5460_v15 = vpack.c.bf16 %v168_v14, %v167_v13  ;;  %v5560_v13 = vld [vmem:[%s6189_s5] ss:$0 sm:$0xff] }
  0x19   :  { %3565 = vmatprep.mubr.msk.f32.mxu0 %vm206_vm1, %v5241_v16 }
  0xe7   :  { %v3553_v19 = vpop.f32.mrb[0].mxu0 }
  0xe8   :  { %v5255_v20 = vadd.f32 %v3553_v19, %v2948_v18  ;;  %v136_v21 = vpop.f32.mrb[1].mxu0  ;;  %v170_v19 = vld [vmem:[%s6188_s4 + $0x78] sm:$0xff] }
  0xe9   :  { %v5257_v22 = vadd.f32 %v2948_v18, %v136_v21 }
  0xeb   :  { %v3556_v23 = vpop.f32.mrb[2].mxu0  ;;  %v4425_v24 = vpack.c.bf16 %v5255_v20, %v5257_v22 }
  0xec   :  { %v5261_v25 = vadd.f32 %v3556_v23, %v2948_v18  ;;  %v146_v26 = vpop.f32.mrb[3].mxu0  ;;  %v2969_v23 = vld [vmem:[%s6188_s4 + $0x100] sm:$0xff] }
  0xed   :  { %v5269_v29 = vadd.f32 %v2948_v18, %v146_v26  ;;  %4426 = vmatprep.subr.bf16.mxu0 %v4425_v24  ;;  %4434 = vmatprep.subr.bf16.mxu1 %v4425_v24  ;;  %v169_v18 = vld [vmem:[%s6188_s4 + $0x70] sm:$0xff] }
  0xee   :  { %4428 = vmatpush3.bf16.msra.mxu0 %v4425_v24  ;;  %4436 = vmatpush3.bf16.msra.mxu1 %v4425_v24  ;;  %v5470_v21 = vpack.c.bf16 %v170_v19, %v169_v18  ;;  %v2970_v24 = vld [vmem:[%s6188_s4 + $0x108] sm:$0xff] }
  0xef   :  { %v4429_v30 = vpack.c.bf16 %v5261_v25, %v5269_v29  ;;  %v5481_v26 = vpack.c.bf16 %v2970_v24, %v2969_v23 }
  0xf1   :  { %4430 = vmatprep.subr.bf16.mxu0 %v4429_v30  ;;  %4438 = vmatprep.subr.bf16.mxu1 %v4429_v30 }
  0xf2   :  { %4432 = vmatpush3.bf16.msra.mxu0 %v4429_v30  ;;  %4440 = vmatpush3.bf16.msra.mxu1 %v4429_v30 }
  0xf3   :  { %4442 = vmatprep.subr.bf16.mxu0 %v5273_v31 }
  0xf5   :  { %3566 = vmatmul.mubr.msk.f32.vlgmr.msra.gmra.mrb[4].mxu0 %vm206_vm1, %v5284_v34  ;;  %3580 = vmatmul.mubr.msk.f32.vlgmr.msra.gmra.mrb[0].mxu1 %vm206_vm1, %v5289_v35 }
  0xf6   :  { %4444 = vmatpush3.bf16.msra.mxu0 %v5273_v31  ;;  %3568 = vmatprep.mubr.msk.f32.mxu0 %vm206_vm1, %v5295_v36 }
  0xf7   :  { %4446 = vmatprep.subr.bf16.mxu0 %v5297_v37  ;;  %3582 = vmatprep.mubr.msk.f32.mxu1 %vm206_vm1, %v5308_v40 }
  0xf9   :  { %3569 = vmatmul.mubr.msk.f32.gmra.mrb[6].mxu0 %vm206_vm1, %v5320_v41  ;;  %3583 = vmatmul.mubr.msk.f32.gmra.mrb[2].mxu1 %vm206_vm1, %v5325_v42 }
  0xfa   :  { %4448 = vmatpush3.bf16.msra.mxu0 %v5297_v37  ;;  %3617 = vmatprep.mubr.f32.mxu0 %v5257_v22 }
  0xfb   :  { %4450 = vmatprep.subr.bf16.mxu0 %v5328_v43  ;;  %3707 = vmatprep.mubr.msk.f32.mxu1 %vm206_vm1, %v5241_v16 }
  0xfe   :  { %4452 = vmatpush3.bf16.msra.mxu0 %v5328_v43 }
  0xff   :  { %4454 = vmatprep.subr.bf16.mxu0 %v5345_v46 }
 0x102   :  { %4456 = vmatpush3.bf16.msra.mxu0 %v5345_v46 }
 0x103   :  { %4458 = vmatprep.subr.bf16.mxu0 %v5357_v49 }
 0x106   :  { %4460 = vmatpush3.bf16.msra.mxu0 %v5357_v49 }
 0x107   :  { %4462 = vmatprep.subr.bf16.mxu0 %v5367_v52 }
 0x10a   :  { %4464 = vmatpush3.bf16.msra.mxu0 %v5367_v52 }
 0x10b   :  { %4466 = vmatprep.subr.bf16.mxu0 %v5377_v55 }
 0x10e   :  { %4468 = vmatpush3.bf16.msra.mxu0 %v5377_v55 }
 0x10f   :  { %4470 = vmatprep.subr.bf16.mxu0 %v5387_v58 }
 0x112   :  { %4472 = vmatpush3.bf16.msra.mxu0 %v5387_v58 }
 0x113   :  { %4474 = vmatprep.subr.bf16.mxu0 %v5397_v61 }
 0x115   :  { %3618 = vmatmul.mubr.f32.vlgmr.msra.gmra.mrb[8].mxu0 %v5255_v20 }
 0x116   :  { %3620 = vmatprep.mubr.f32.mxu0 %v5269_v29  ;;  %4476 = vmatpush3.bf16.msra.mxu0 %v5397_v61 }
 0x117   :  { %4478 = vmatprep.subr.bf16.mxu0 %v5407_v0 }
 0x119   :  { %3621 = vmatmul.mubr.f32.gmra.mrb[10].mxu0 %v5261_v25 }
 0x11a   :  { %4480 = vmatpush3.bf16.msra.mxu0 %v5407_v0 }
 0x11b   :  { %4482 = vmatprep.subr.bf16.mxu0 %v5419_v3 }
 0x11e   :  { %4484 = vmatpush3.bf16.msra.mxu0 %v5419_v3 }
 0x11f   :  { %4486 = vmatprep.subr.bf16.mxu0 %v5430_v6 }
 0x122   :  { %4488 = vmatpush3.bf16.msra.mxu0 %v5430_v6 }
 0x123   :  { %4490 = vmatprep.subr.bf16.mxu0 %v5440_v9 }
 0x126   :  { %4492 = vmatpush3.bf16.msra.mxu0 %v5440_v9 }
 0x127   :  { %4494 = vmatprep.subr.bf16.mxu0 %v5450_v12 }
 0x12a   :  { %4496 = vmatpush3.bf16.msra.mxu0 %v5450_v12 }
 0x12b   :  { %4498 = vmatprep.subr.bf16.mxu0 %v5460_v15 }
 0x12e   :  { %4500 = vmatpush3.bf16.msra.mxu0 %v5460_v15 }
 0x12f   :  { %4502 = vmatprep.subr.bf16.mxu0 %v5470_v21 }
 0x132   :  { %4504 = vmatpush3.bf16.msra.mxu0 %v5470_v21 }
 0x133   :  { %4506 = vmatprep.subr.bf16.mxu0 %v5481_v26 }
 0x1c8   :  { %v3567_v30 = vpop.f32.mrb[4].mxu0  ;;  %v3581_v32 = vpop.f32.mrb[0].mxu1 }
 0x1c9   :  { %v285_v33 = vpop.f32.mrb[5].mxu0  ;;  %v382_v39 = vpop.f32.mrb[1].mxu1 }
 0x1ca   :  { %3655 = vmatprep.mubr.f32.mxu0 %v285_v33 }
 0x1cb   :  { %3656 = vmatmul.mubr.f32.vlgmr.msra.gmra.mrb[8].mxu0 %v3567_v30 }
 0x1cc   :  { %4508 = vmatpush3.bf16.msra.mxu0 %v5481_v26  ;;  %v3570_v47 = vpop.f32.mrb[6].mxu0  ;;  %v3584_v48 = vpop.f32.mrb[2].mxu1 }
 0x1cd   :  { %4510 = vmatprep.subr.bf16.mxu0 %v5490_v38  ;;  %v295_v51 = vpop.f32.mrb[7].mxu0  ;;  %v392_v53 = vpop.f32.mrb[3].mxu1 }
 0x1ce   :  { %3658 = vmatprep.mubr.f32.mxu0 %v295_v51 }
 0x1cf   :  { %3659 = vmatmul.mubr.f32.gmra.mrb[10].mxu0 %v3570_v47 }
 0x1d0   :  { %4512 = vmatpush3.bf16.msra.mxu0 %v5490_v38  ;;  %3693 = vmatprep.mubr.f32.mxu0 %v382_v39 }
 0x1d1   :  { %4514 = vmatprep.subr.bf16.mxu0 %v5500_v50 }
 0x1d4   :  { %4516 = vmatpush3.bf16.msra.mxu0 %v5500_v50 }
 0x1d5   :  { %4518 = vmatprep.subr.bf16.mxu0 %v5510_v57 }
 0x1d8   :  { %4520 = vmatpush3.bf16.msra.mxu0 %v5510_v57 }
 0x1d9   :  { %4522 = vmatprep.subr.bf16.mxu0 %v5520_v62 }
 0x1dc   :  { %4524 = vmatpush3.bf16.msra.mxu0 %v5520_v62 }
 0x1dd   :  { %4526 = vmatprep.subr.bf16.mxu0 %v5530_v2 }
 0x1e0   :  { %4528 = vmatpush3.bf16.msra.mxu0 %v5530_v2 }
 0x1e1   :  { %4530 = vmatprep.subr.bf16.mxu0 %v5540_v7 }
 0x1e4   :  { %4532 = vmatpush3.bf16.msra.mxu0 %v5540_v7 }
 0x1e5   :  { %4534 = vmatprep.subr.bf16.mxu0 %v5550_v11 }
 0x1e8   :  { %4536 = vmatpush3.bf16.msra.mxu0 %v5550_v11 }
 0x1eb   :  { %3694 = vmatmul.mubr.f32.vlgmr.msra.gmra.mrb[8].mxu0 %v3581_v32 }
 0x1ec   :  { %3696 = vmatprep.mubr.f32.mxu0 %v392_v53 }
 0x1ef   :  { %3697 = vmatmul.mubr.f32.gmra.mrb[10].mxu0 %v3584_v48 }
 0x1f0   :  { %3849 = vmatprep.mubr.msk.f32.mxu0 %vm206_vm1, %v5241_v16 }
 0x2be   :  { %v3695_v14 = vpop.f32.mrb[8].mxu0 }
 0x2bf   :  { %v667_v18 = vadd.f32 %v3695_v14, %v5560_v13  ;;  %v637_v19 = vpop.f32.mrb[9].mxu0 }
 0x2c0   :  { %v666_v23 = vadd.f32 %v5560_v13, %v637_v19 }
 0x2c1   :  { %v671_v24 = vmax.f32 %v667_v18, 0.0 }
 0x2c2   :  { %v670_v27 = vmax.f32 %v666_v23, 0.0  ;;  %v3698_v28 = vpop.f32.mrb[10].mxu0 }
 0x2c3   :  { %v675_v30 = vadd.f32 %v671_v24, %v5255_v20  ;;  %v669_v32 = vadd.f32 %v3698_v28, %v5560_v13  ;;  %v647_v33 = vpop.f32.mrb[11].mxu0 }
 0x2c4   :  { %v674_v39 = vadd.f32 %v670_v27, %v5257_v22  ;;  %v668_v44 = vadd.f32 %v5560_v13, %v647_v33 }
 0x2c5   :  { %v673_v45 = vmax.f32 %v669_v32, 0.0 }
 0x2c6   :  { %v4537_v47 = vpack.c.bf16 %v675_v30, %v674_v39  ;;  %v672_v48 = vmax.f32 %v668_v44, 0.0 }
 0x2c7   :  { %v677_v51 = vadd.f32 %v673_v45, %v5261_v25 }
 0x2c8   :  { %v676_v53 = vadd.f32 %v672_v48, %v5269_v29  ;;  %4538 = vmatprep.subr.bf16.mxu1 %v4537_v47 }
 0x2c9   :  { %4540 = vmatpush3.bf16.msra.mxu1 %v4537_v47 }
 0x2ca   :  { %v4541_v54 = vpack.c.bf16 %v677_v51, %v676_v53 }
 0x2cc   :  { %4542 = vmatprep.subr.bf16.mxu1 %v4541_v54 }
 0x2cd   :  { %4544 = vmatpush3.bf16.msra.mxu1 %v4541_v54 }
 0x2ce   :  { %4546 = vmatprep.subr.bf16.mxu1 %v4537_v47 }
 0x2d0   :  { %3708 = vmatmul.mubr.msk.f32.vlgmr.msra.gmra.mrb[4].mxu1 %vm206_vm1, %v5284_v34 }
 0x2d1   :  { %4548 = vmatpush3.bf16.msra.mxu1 %v4537_v47  ;;  %3710 = vmatprep.mubr.msk.f32.mxu1 %vm206_vm1, %v5295_v36 }
 0x2d2   :  { %4550 = vmatprep.subr.bf16.mxu1 %v4541_v54 }
 0x2d4   :  { %3711 = vmatmul.mubr.msk.f32.gmra.mrb[6].mxu1 %vm206_vm1, %v5320_v41 }
 0x2d5   :  { %4552 = vmatpush3.bf16.msra.mxu1 %v4541_v54  ;;  %3721 = vmatprep.mubr.msk.f32.mxu1 %vm206_vm1, %v5248_v17  ;;  %v3013_v54 = vld [vmem:[%s6190_s6 + $0x98] sm:$0xff] }
 0x2d6   :  { %4554 = vmatprep.subr.bf16.mxu1 %v5273_v31 }
 0x2d8   :  { %3722 = vmatmul.mubr.msk.f32.vlgmr.msra.gmra.mrb[8].mxu1 %vm206_vm1, %v5289_v35 }
 0x2d9   :  { %4556 = vmatpush3.bf16.msra.mxu1 %v5273_v31  ;;  %3724 = vmatprep.mubr.msk.f32.mxu1 %vm206_vm1, %v5308_v40 }
 0x2da   :  { %4558 = vmatprep.subr.bf16.mxu1 %v5297_v37 }
 0x2dc   :  { %3725 = vmatmul.mubr.msk.f32.gmra.mrb[10].mxu1 %vm206_vm1, %v5325_v42 }
 0x2dd   :  { %4560 = vmatpush3.bf16.msra.mxu1 %v5297_v37  ;;  %3759 = vmatprep.mubr.f32.mxu1 %v674_v39 }
 0x2de   :  { %4562 = vmatprep.subr.bf16.mxu1 %v5328_v43 }
 0x2e1   :  { %4564 = vmatpush3.bf16.msra.mxu1 %v5328_v43 }
 0x2e2   :  { %4566 = vmatprep.subr.bf16.mxu1 %v5345_v46 }
 0x2e5   :  { %4568 = vmatpush3.bf16.msra.mxu1 %v5345_v46 }
 0x2e6   :  { %4570 = vmatprep.subr.bf16.mxu1 %v5357_v49 }
 0x2e9   :  { %4572 = vmatpush3.bf16.msra.mxu1 %v5357_v49 }
 0x2ea   :  { %4574 = vmatprep.subr.bf16.mxu1 %v5367_v52 }
 0x2ed   :  { %4576 = vmatpush3.bf16.msra.mxu1 %v5367_v52 }
 0x2ee   :  { %4578 = vmatprep.subr.bf16.mxu1 %v5377_v55 }
 0x2f1   :  { %4580 = vmatpush3.bf16.msra.mxu1 %v5377_v55 }
 0x2f2   :  { %4582 = vmatprep.subr.bf16.mxu1 %v5387_v58 }
 0x2f5   :  { %4584 = vmatpush3.bf16.msra.mxu1 %v5387_v58 }
 0x2f6   :  { %4586 = vmatprep.subr.bf16.mxu1 %v5397_v61 }
 0x2f8   :  { %3760 = vmatmul.mubr.f32.vlgmr.msra.gmra.mrb[12].mxu1 %v675_v30 }
 0x2f9   :  { %3762 = vmatprep.mubr.f32.mxu1 %v676_v53  ;;  %4588 = vmatpush3.bf16.msra.mxu1 %v5397_v61 }
 0x2fa   :  { %4590 = vmatprep.subr.bf16.mxu1 %v5407_v0 }
 0x2fc   :  { %3763 = vmatmul.mubr.f32.gmra.mrb[14].mxu1 %v677_v51 }
 0x2fd   :  { %4592 = vmatpush3.bf16.msra.mxu1 %v5407_v0 }
 0x2fe   :  { %4594 = vmatprep.subr.bf16.mxu1 %v5419_v3 }
 0x301   :  { %4596 = vmatpush3.bf16.msra.mxu1 %v5419_v3 }
 0x302   :  { %4598 = vmatprep.subr.bf16.mxu1 %v5430_v6 }
 0x305   :  { %4600 = vmatpush3.bf16.msra.mxu1 %v5430_v6 }
 0x306   :  { %4602 = vmatprep.subr.bf16.mxu1 %v5440_v9 }
 0x309   :  { %4604 = vmatpush3.bf16.msra.mxu1 %v5440_v9 }
 0x30a   :  { %4606 = vmatprep.subr.bf16.mxu1 %v5450_v12 }
 0x30d   :  { %4608 = vmatpush3.bf16.msra.mxu1 %v5450_v12 }
 0x30e   :  { %4610 = vmatprep.subr.bf16.mxu1 %v5460_v15 }
 0x311   :  { %4612 = vmatpush3.bf16.msra.mxu1 %v5460_v15 }
 0x312   :  { %4614 = vmatprep.subr.bf16.mxu1 %v5470_v21 }
 0x315   :  { %4616 = vmatpush3.bf16.msra.mxu1 %v5470_v21 }
 0x316   :  { %4618 = vmatprep.subr.bf16.mxu1 %v5481_v26 }
 0x3a3   :  { %v3709_v56 = vpop.f32.mrb[4].mxu1 }
 0x3a4   :  { %v744_v59 = vpop.f32.mrb[5].mxu1 }
 0x3a5   :  { %3797 = vmatprep.mubr.f32.mxu1 %v744_v59  ;;  %v3017_v59 = vld [vmem:[%s6190_s6 + $0xb8] sm:$0xff] }
 0x3a6   :  { %3798 = vmatmul.mubr.f32.vlgmr.msra.gmra.mrb[12].mxu1 %v3709_v56  ;;  %v3015_v56 = vld [vmem:[%s6190_s6 + $0xa8] sm:$0xff] }
 0x3a7   :  { %4620 = vmatpush3.bf16.msra.mxu1 %v5481_v26  ;;  %v3712_v60 = vpop.f32.mrb[6].mxu1 }
 0x3a8   :  { %4622 = vmatprep.subr.bf16.mxu1 %v5490_v38  ;;  %v754_v63 = vpop.f32.mrb[7].mxu1 }
 0x3a9   :  { %3800 = vmatprep.mubr.f32.mxu1 %v754_v63  ;;  %v3020_v63 = vld [vmem:[%s6190_s6 + $0xd0] sm:$0xff] }
 0x3aa   :  { %3801 = vmatmul.mubr.f32.gmra.mrb[14].mxu1 %v3712_v60  ;;  %v3019_v60 = vld [vmem:[%s6190_s6 + $0xc8] sm:$0xff] }
 0x3ab   :  { %4624 = vmatpush3.bf16.msra.mxu1 %v5490_v38  ;;  %v3723_v1 = vpop.f32.mrb[8].mxu1 }
 0x3ac   :  { %4626 = vmatprep.subr.bf16.mxu1 %v5500_v50  ;;  %v829_v4 = vpop.f32.mrb[9].mxu1 }
 0x3ad   :  { %3835 = vmatprep.mubr.f32.mxu1 %v829_v4 }
 0x3af   :  { %4628 = vmatpush3.bf16.msra.mxu1 %v5500_v50  ;;  %v3726_v5 = vpop.f32.mrb[10].mxu1 }
 0x3b0   :  { %4630 = vmatprep.subr.bf16.mxu1 %v5510_v57  ;;  %v839_v8 = vpop.f32.mrb[11].mxu1 }
 0x3b3   :  { %4632 = vmatpush3.bf16.msra.mxu1 %v5510_v57 }
 0x3b4   :  { %4634 = vmatprep.subr.bf16.mxu1 %v5520_v62 }
 0x3b7   :  { %4636 = vmatpush3.bf16.msra.mxu1 %v5520_v62 }
 0x3b8   :  { %4638 = vmatprep.subr.bf16.mxu1 %v5530_v2 }
 0x3bb   :  { %4640 = vmatpush3.bf16.msra.mxu1 %v5530_v2 }
 0x3bc   :  { %4642 = vmatprep.subr.bf16.mxu1 %v5540_v7 }
 0x3bf   :  { %4644 = vmatpush3.bf16.msra.mxu1 %v5540_v7 }
 0x3c0   :  { %4646 = vmatprep.subr.bf16.mxu1 %v5550_v11 }
 0x3c3   :  { %4648 = vmatpush3.bf16.msra.mxu1 %v5550_v11 }
 0x3c6   :  { %3836 = vmatmul.mubr.f32.vlgmr.msra.gmra.mrb[12].mxu1 %v3723_v1  ;;  %v3021_v1 = vld [vmem:[%s6190_s6 + $0xd8] sm:$0xff] }
 0x3c7   :  { %3838 = vmatprep.mubr.f32.mxu1 %v839_v8  ;;  %v5792_v4 = vpack.c.bf16 %v3021_v1, %v3020_v63  ;;  %v3023_v8 = vld [vmem:[%s6190_s6 + $0xe8] sm:$0xff]  ;;  %v3034_v63 = vld [vmem:[%s6190_s6 + $0x140] sm:$0xff] }
 0x3c8   :  { %v3035_v1 = vld [vmem:[%s6190_s6 + $0x148] sm:$0xff] }
 0x3ca   :  { %3839 = vmatmul.mubr.f32.gmra.mrb[14].mxu1 %v3726_v5  ;;  %v3022_v5 = vld [vmem:[%s6190_s6 + $0xe0] sm:$0xff] }
 0x3cb   :  { %3991 = vmatprep.mubr.msk.f32.mxu1 %vm206_vm1, %v5241_v16 }
 0x499   :  { %v3837_v10 = vpop.f32.mrb[12].mxu1 }
 0x49a   :  { %v1108_v14 = vadd.f32 %v3837_v10, %v5560_v13  ;;  %v1084_v18 = vpop.f32.mrb[13].mxu1  ;;  %v5802_v10 = vpack.c.bf16 %v3023_v8, %v3022_v5  ;;  %v5945_v8 = vpack.c.bf16 %v3035_v1, %v3034_v63  ;;  %v6014_v63 = vld [vmem:[%s6186_s1 + $0x18] sm:$0xff]  ;;  %v6021_v1 = vld [vmem:[%s6186_s1 + $0x20] sm:$0xff] }
 0x49b   :  { %v1107_v19 = vadd.f32 %v5560_v13, %v1084_v18  ;;  %v3025_v18 = vld [vmem:[%s6190_s6 + $0xf8] sm:$0xff] }
 0x49c   :  { %v1112_v23 = vmax.f32 %v1108_v14, 0.0  ;;  %v3024_v14 = vld [vmem:[%s6190_s6 + $0xf0] sm:$0xff] }
 0x49d   :  { %v1111_v24 = vmax.f32 %v1107_v19, 0.0  ;;  %v3840_v27 = vpop.f32.mrb[14].mxu1  ;;  %v5812_v19 = vpack.c.bf16 %v3025_v18, %v3024_v14  ;;  %v3036_v18 = vld [vmem:[%s6190_s6 + $0x150] sm:$0xff] }
 0x49e   :  { %v1116_v28 = vadd.f32 %v1112_v23, %v5255_v20  ;;  %v1110_v30 = vadd.f32 %v3840_v27, %v5560_v13  ;;  %v1094_v32 = vpop.f32.mrb[15].mxu1  ;;  %v1556_v23 = vld [vmem:[%s6190_s6] sm:$0xff] }
 0x49f   :  { %v1115_v33 = vadd.f32 %v1111_v24, %v5257_v22  ;;  %v1109_v39 = vadd.f32 %v5560_v13, %v1094_v32  ;;  %v1557_v24 = vld [vmem:[%s6190_s6 + $0x8] sm:$0xff] }
 0x4a0   :  { %v1114_v44 = vmax.f32 %v1110_v30, 0.0  ;;  %v5822_v27 = vpack.c.bf16 %v1557_v24, %v1556_v23  ;;  %v1559_v30 = vld [vmem:[%s6190_s6 + $0x18] sm:$0xff] }
 0x4a1   :  { %v4649_v45 = vpack.c.bf16 %v1116_v28, %v1115_v33  ;;  %v1113_v47 = vmax.f32 %v1109_v39, 0.0  ;;  %v1561_v39 = vld [vmem:[%s6190_s6 + $0x28] sm:$0xff]  ;;  %v3037_v23 = vld [vmem:[%s6190_s6 + $0x158] sm:$0xff] }
 0x4a2   :  { %v1118_v48 = vadd.f32 %v1114_v44, %v5261_v25  ;;  %v5955_v24 = vpack.c.bf16 %v3037_v23, %v3036_v18  ;;  %v6045_v18 = vld [vmem:[%s6186_s1 + $0x38] sm:$0xff] }
 0x4a3   :  { %v1117_v51 = vadd.f32 %v1113_v47, %v5269_v29  ;;  %4650 = vmatprep.subr.bf16.mxu0 %v4649_v45  ;;  %v1563_v47 = vld [vmem:[%s6190_s6 + $0x38] sm:$0xff] }
 0x4a4   :  { %4652 = vmatpush3.bf16.msra.mxu0 %v4649_v45 }
 0x4a5   :  { %v4653_v53 = vpack.c.bf16 %v1118_v48, %v1117_v51 }
 0x4a7   :  { %4654 = vmatprep.subr.bf16.mxu0 %v4653_v53 }
 0x4a8   :  { %4656 = vmatpush3.bf16.msra.mxu0 %v4653_v53 }
 0x4a9   :  { %4658 = vmatprep.subr.bf16.mxu0 %v4649_v45 }
 0x4ab   :  { %3850 = vmatmul.mubr.msk.f32.vlgmr.msra.gmra.mrb[12].mxu0 %vm206_vm1, %v5284_v34 }
 0x4ac   :  { %4660 = vmatpush3.bf16.msra.mxu0 %v4649_v45  ;;  %3852 = vmatprep.mubr.msk.f32.mxu0 %vm206_vm1, %v5295_v36  ;;  %v1562_v45 = vld [vmem:[%s6190_s6 + $0x30] sm:$0xff] }
 0x4ad   :  { %4662 = vmatprep.subr.bf16.mxu0 %v4653_v53 }
 0x4af   :  { %3853 = vmatmul.mubr.msk.f32.gmra.mrb[14].mxu0 %vm206_vm1, %v5320_v41 }
 0x4b0   :  { %4664 = vmatpush3.bf16.msra.mxu0 %v4653_v53  ;;  %3863 = vmatprep.mubr.msk.f32.mxu0 %vm206_vm1, %v5248_v17  ;;  %v1565_v53 = vld [vmem:[%s6190_s6 + $0x48] sm:$0xff] }
 0x4b1   :  { %4666 = vmatprep.subr.bf16.mxu0 %v5273_v31 }
 0x4b3   :  { %3864 = vmatmul.mubr.msk.f32.vlgmr.msra.gmra.mrb[16].mxu0 %vm206_vm1, %v5289_v35 }
 0x4b4   :  { %4668 = vmatpush3.bf16.msra.mxu0 %v5273_v31  ;;  %3866 = vmatprep.mubr.msk.f32.mxu0 %vm206_vm1, %v5308_v40 }
 0x4b5   :  { %4670 = vmatprep.subr.bf16.mxu0 %v5297_v37 }
 0x4b7   :  { %3867 = vmatmul.mubr.msk.f32.gmra.mrb[18].mxu0 %vm206_vm1, %v5325_v42 }
 0x4b8   :  { %4672 = vmatpush3.bf16.msra.mxu0 %v5297_v37  ;;  %3901 = vmatprep.mubr.f32.mxu0 %v1115_v33  ;;  %v1560_v33 = vld [vmem:[%s6190_s6 + $0x20] sm:$0xff] }
 0x4b9   :  { %4674 = vmatprep.subr.bf16.mxu0 %v5328_v43  ;;  %v5844_v44 = vpack.c.bf16 %v1561_v39, %v1560_v33  ;;  %v3040_v39 = vld [vmem:[%s6190_s6 + $0x170] sm:$0xff] }
 0x4bc   :  { %4676 = vmatpush3.bf16.msra.mxu0 %v5328_v43 }
 0x4bd   :  { %4678 = vmatprep.subr.bf16.mxu0 %v5345_v46 }
 0x4c0   :  { %4680 = vmatpush3.bf16.msra.mxu0 %v5345_v46 }
 0x4c1   :  { %4682 = vmatprep.subr.bf16.mxu0 %v5357_v49 }
 0x4c4   :  { %4684 = vmatpush3.bf16.msra.mxu0 %v5357_v49 }
 0x4c5   :  { %4686 = vmatprep.subr.bf16.mxu0 %v5367_v52 }
 0x4c8   :  { %4688 = vmatpush3.bf16.msra.mxu0 %v5367_v52 }
 0x4c9   :  { %4690 = vmatprep.subr.bf16.mxu0 %v5377_v55 }
 0x4cc   :  { %4692 = vmatpush3.bf16.msra.mxu0 %v5377_v55 }
 0x4cd   :  { %4694 = vmatprep.subr.bf16.mxu0 %v5387_v58 }
 0x4d0   :  { %4696 = vmatpush3.bf16.msra.mxu0 %v5387_v58 }
 0x4d1   :  { %4698 = vmatprep.subr.bf16.mxu0 %v5397_v61 }
 0x4d3   :  { %3902 = vmatmul.mubr.f32.vlgmr.msra.gmra.mrb[20].mxu0 %v1116_v28  ;;  %v1558_v28 = vld [vmem:[%s6190_s6 + $0x10] sm:$0xff] }
 0x4d4   :  { %3904 = vmatprep.mubr.f32.mxu0 %v1117_v51  ;;  %4700 = vmatpush3.bf16.msra.mxu0 %v5397_v61  ;;  %v5832_v32 = vpack.c.bf16 %v1559_v30, %v1558_v28  ;;  %v1564_v51 = vld [vmem:[%s6190_s6 + $0x40] sm:$0xff]  ;;  %v3039_v30 = vld [vmem:[%s6190_s6 + $0x168] sm:$0xff] }
 0x4d5   :  { %4702 = vmatprep.subr.bf16.mxu0 %v5407_v0  ;;  %v3038_v28 = vld [vmem:[%s6190_s6 + $0x160] sm:$0xff] }
 0x4d6   :  { %v5965_v33 = vpack.c.bf16 %v3039_v30, %v3038_v28 }
 0x4d7   :  { %3905 = vmatmul.mubr.f32.gmra.mrb[22].mxu0 %v1118_v48  ;;  %v5855_v48 = vpack.c.bf16 %v1563_v47, %v1562_v45  ;;  %v3041_v45 = vld [vmem:[%s6190_s6 + $0x178] sm:$0xff] }
 0x4d8   :  { %4704 = vmatpush3.bf16.msra.mxu0 %v5407_v0  ;;  %v5975_v47 = vpack.c.bf16 %v3041_v45, %v3040_v39 }
 0x4d9   :  { %4706 = vmatprep.subr.bf16.mxu0 %v5419_v3 }
 0x4dc   :  { %4708 = vmatpush3.bf16.msra.mxu0 %v5419_v3 }
 0x4dd   :  { %4710 = vmatprep.subr.bf16.mxu0 %v5430_v6 }
 0x4e0   :  { %4712 = vmatpush3.bf16.msra.mxu0 %v5430_v6 }
 0x4e1   :  { %4714 = vmatprep.subr.bf16.mxu0 %v5440_v9 }
 0x4e4   :  { %4716 = vmatpush3.bf16.msra.mxu0 %v5440_v9 }
 0x4e5   :  { %4718 = vmatprep.subr.bf16.mxu0 %v5450_v12 }
 0x4e8   :  { %4720 = vmatpush3.bf16.msra.mxu0 %v5450_v12 }
 0x4e9   :  { %4722 = vmatprep.subr.bf16.mxu0 %v5460_v15 }
 0x4ec   :  { %4724 = vmatpush3.bf16.msra.mxu0 %v5460_v15 }
 0x4ed   :  { %4726 = vmatprep.subr.bf16.mxu0 %v5470_v21 }
 0x4f0   :  { %4728 = vmatpush3.bf16.msra.mxu0 %v5470_v21 }
 0x4f1   :  { %4730 = vmatprep.subr.bf16.mxu0 %v5481_v26 }
 0x57e   :  { %v3851_v31 = vpop.f32.mrb[12].mxu0 }
 0x57f   :  { %v1185_v37 = vpop.f32.mrb[13].mxu0 }
 0x580   :  { %3939 = vmatprep.mubr.f32.mxu0 %v1185_v37  ;;  %v1566_v37 = vld [vmem:[%s6190_s6 + $0x50] sm:$0xff] }
 0x581   :  { %3940 = vmatmul.mubr.f32.vlgmr.msra.gmra.mrb[20].mxu0 %v3851_v31  ;;  %v5865_v31 = vpack.c.bf16 %v1565_v53, %v1564_v51  ;;  %v5145_v51 = vld [vmem:[%s6186_s1] sm:$0xff] }
 0x582   :  { %4732 = vmatpush3.bf16.msra.mxu0 %v5481_v26  ;;  %v3854_v43 = vpop.f32.mrb[14].mxu0  ;;  %v5987_v53 = vld [vmem:[%s6191_s7] ss:$0 sm:$0xff] }
 0x583   :  { %4734 = vmatprep.subr.bf16.mxu0 %v5490_v38  ;;  %v1195_v46 = vpop.f32.mrb[15].mxu0 }
 0x584   :  { %3942 = vmatprep.mubr.f32.mxu0 %v1195_v46 }
 0x585   :  { %3943 = vmatmul.mubr.f32.gmra.mrb[22].mxu0 %v3854_v43  ;;  %v1567_v43 = vld [vmem:[%s6190_s6 + $0x58] sm:$0xff] }
 0x586   :  { %4736 = vmatpush3.bf16.msra.mxu0 %v5490_v38  ;;  %v3865_v49 = vpop.f32.mrb[16].mxu0  ;;  %v5875_v46 = vpack.c.bf16 %v1567_v43, %v1566_v37 }
 0x587   :  { %4738 = vmatprep.subr.bf16.mxu0 %v5500_v50  ;;  %v1270_v52 = vpop.f32.mrb[17].mxu0 }
 0x588   :  { %3977 = vmatprep.mubr.f32.mxu0 %v1270_v52  ;;  %v1569_v52 = vld [vmem:[%s6190_s6 + $0x68] sm:$0xff] }
 0x58a   :  { %4740 = vmatpush3.bf16.msra.mxu0 %v5500_v50  ;;  %v3868_v55 = vpop.f32.mrb[18].mxu0 }
 0x58b   :  { %4742 = vmatprep.subr.bf16.mxu0 %v5510_v57  ;;  %v1280_v58 = vpop.f32.mrb[19].mxu0 }
 0x58e   :  { %4744 = vmatpush3.bf16.msra.mxu0 %v5510_v57 }
 0x58f   :  { %4746 = vmatprep.subr.bf16.mxu0 %v5520_v62 }
 0x592   :  { %4748 = vmatpush3.bf16.msra.mxu0 %v5520_v62 }
 0x593   :  { %4750 = vmatprep.subr.bf16.mxu0 %v5530_v2 }
 0x596   :  { %4752 = vmatpush3.bf16.msra.mxu0 %v5530_v2  ;;  %v3010_v2 = vld [vmem:[%s6190_s6 + $0x80] sm:$0xff] }
 0x597   :  { %4754 = vmatprep.subr.bf16.mxu0 %v5540_v7 }
 0x59a   :  { %4756 = vmatpush3.bf16.msra.mxu0 %v5540_v7  ;;  %v3011_v7 = vld [vmem:[%s6190_s6 + $0x88] sm:$0xff] }
 0x59b   :  { %4758 = vmatprep.subr.bf16.mxu0 %v5550_v11 }
 0x59e   :  { %4760 = vmatpush3.bf16.msra.mxu0 %v5550_v11  ;;  %v5732_v11 = vpack.c.bf16 %v3011_v7, %v3010_v2  ;;  %v3030_v2 = vld [vmem:[%s6190_s6 + $0x120] sm:$0xff]  ;;  %v3031_v7 = vld [vmem:[%s6190_s6 + $0x128] sm:$0xff] }
 0x5a1   :  { %3978 = vmatmul.mubr.f32.vlgmr.msra.gmra.mrb[20].mxu0 %v3865_v49  ;;  %v1568_v49 = vld [vmem:[%s6190_s6 + $0x60] sm:$0xff] }
 0x5a2   :  { %3980 = vmatprep.mubr.f32.mxu0 %v1280_v58  ;;  %v1570_v58 = vld [vmem:[%s6190_s6 + $0x70] sm:$0xff] }
 0x5a5   :  { %3981 = vmatmul.mubr.f32.gmra.mrb[22].mxu0 %v3868_v55  ;;  %v5885_v55 = vpack.c.bf16 %v1569_v52, %v1568_v49 }
 0x5a6   :  { %4133 = vmatprep.mubr.msk.f32.mxu0 %vm206_vm1, %v5241_v16 }
 0x674   :  { %v3979_v61 = vpop.f32.mrb[20].mxu0 }
 0x675   :  { %v1549_v0 = vadd.f32 %v3979_v61, %v5560_v13  ;;  %v1525_v3 = vpop.f32.mrb[21].mxu0  ;;  %v1571_v61 = vld [vmem:[%s6190_s6 + $0x78] sm:$0xff] }
 0x676   :  { %v1548_v6 = vadd.f32 %v5560_v13, %v1525_v3  ;;  %v3026_v3 = vld [vmem:[%s6190_s6 + $0x100] sm:$0xff] }
 0x677   :  { %v5708_v9 = vmax.f32 %v1549_v0, 0.0  ;;  %v5895_v0 = vpack.c.bf16 %v1571_v61, %v1570_v58 }
 0x678   :  { %v5710_v12 = vmax.f32 %v1548_v6, 0.0  ;;  %v3982_v15 = vpop.f32.mrb[22].mxu0  ;;  %v3027_v6 = vld [vmem:[%s6190_s6 + $0x108] sm:$0xff] }
 0x679   :  { %v1551_v21 = vadd.f32 %v3982_v15, %v5560_v13  ;;  %v1535_v26 = vpop.f32.mrb[23].mxu0  ;;  %v5906_v15 = vpack.c.bf16 %v3027_v6, %v3026_v3 }
 0x67a   :  { %v1550_v38 = vadd.f32 %v5560_v13, %v1535_v26  ;;  %v4761_v50 = vpack.c.bf16 %v5708_v9, %v5710_v12  ;;  %v3012_v13 = vld [vmem:[%s6190_s6 + $0x90] sm:$0xff]  ;;  %v3029_v26 = vld [vmem:[%s6190_s6 + $0x118] sm:$0xff] }
 0x67b   :  { %v5716_v16 = vmax.f32 %v1551_v21, 0.0  ;;  %v3028_v21 = vld [vmem:[%s6190_s6 + $0x110] sm:$0xff] }
 0x67c   :  { %v5718_v57 = vmax.f32 %v1550_v38, 0.0  ;;  %4762 = vmatprep.subr.bf16.mxu1 %v4761_v50 }
 0x67d   :  { %4764 = vmatpush3.bf16.msra.mxu1 %v4761_v50 }
 0x67e   :  { %v4765_v62 = vpack.c.bf16 %v5716_v16, %v5718_v57 }
 0x680   :  { %4766 = vmatprep.subr.bf16.mxu1 %v4765_v62 }
 0x681   :  { %4768 = vmatpush3.bf16.msra.mxu1 %v4765_v62 }
 0x682   :  { %4770 = vmatprep.subr.bf16.mxu1 %v4761_v50 }
 0x684   :  { %3992 = vmatmul.mubr.msk.f32.vlgmr.msra.gmra.mrb[16].mxu1 %vm206_vm1, %v5284_v34  ;;  %v5745_v34 = vpack.c.bf16 %v3013_v54, %v3012_v13  ;;  %v5925_v54 = vpack.c.bf16 %v3031_v7, %v3030_v2 }
 0x685   :  { %4772 = vmatpush3.bf16.msra.mxu1 %v4761_v50  ;;  %3994 = vmatprep.mubr.msk.f32.mxu1 %vm206_vm1, %v5295_v36  ;;  %v3014_v36 = vld [vmem:[%s6190_s6 + $0xa0] sm:$0xff] }
 0x686   :  { %4774 = vmatprep.subr.bf16.mxu1 %v4765_v62 }
 0x688   :  { %3995 = vmatmul.mubr.msk.f32.gmra.mrb[18].mxu1 %vm206_vm1, %v5320_v41  ;;  %v3016_v41 = vld [vmem:[%s6190_s6 + $0xb0] sm:$0xff] }
 0x689   :  { %4776 = vmatpush3.bf16.msra.mxu1 %v4765_v62  ;;  %4005 = vmatprep.mubr.msk.f32.mxu1 %vm206_vm1, %v5248_v17  ;;  %v5759_v17 = vpack.c.bf16 %v3015_v56, %v3014_v36  ;;  %v5915_v62 = vpack.c.bf16 %v3029_v26, %v3028_v21  ;;  %v3032_v56 = vld [vmem:[%s6190_s6 + $0x130] sm:$0xff] }
 0x68a   :  { %4778 = vmatprep.subr.bf16.mxu1 %v5732_v11 }
 0x68c   :  { %4006 = vmatmul.mubr.msk.f32.vlgmr.msra.gmra.mrb[20].mxu1 %vm206_vm1, %v5289_v35  ;;  %v5772_v35 = vpack.c.bf16 %v3017_v59, %v3016_v41  ;;  %v3033_v41 = vld [vmem:[%s6190_s6 + $0x138] sm:$0xff] }
 0x68d   :  { %4780 = vmatpush3.bf16.msra.mxu1 %v5732_v11  ;;  %4008 = vmatprep.mubr.msk.f32.mxu1 %vm206_vm1, %v5308_v40  ;;  %v3018_v40 = vld [vmem:[%s6190_s6 + $0xc0] sm:$0xff] }
 0x68e   :  { %4782 = vmatprep.subr.bf16.mxu1 %v5745_v34 }
 0x690   :  { %4009 = vmatmul.mubr.msk.f32.gmra.mrb[22].mxu1 %vm206_vm1, %v5325_v42  ;;  %v5782_v42 = vpack.c.bf16 %v3019_v60, %v3018_v40  ;;  %v5935_v40 = vpack.c.bf16 %v3033_v41, %v3032_v56 }
 0x691   :  { %4784 = vmatpush3.bf16.msra.mxu1 %v5745_v34  ;;  %4043 = vmatprep.mubr.f32.mxu1 %v5710_v12 }
 0x692   :  { %4786 = vmatprep.subr.bf16.mxu1 %v5759_v17 }
 0x695   :  { %4788 = vmatpush3.bf16.msra.mxu1 %v5759_v17 }
 0x696   :  { %4790 = vmatprep.subr.bf16.mxu1 %v5772_v35 }
 0x699   :  { %4792 = vmatpush3.bf16.msra.mxu1 %v5772_v35 }
 0x69a   :  { %4794 = vmatprep.subr.bf16.mxu1 %v5782_v42 }
 0x69d   :  { %4796 = vmatpush3.bf16.msra.mxu1 %v5782_v42 }
 0x69e   :  { %4798 = vmatprep.subr.bf16.mxu1 %v5792_v4 }
 0x6a1   :  { %4800 = vmatpush3.bf16.msra.mxu1 %v5792_v4 }
 0x6a2   :  { %4802 = vmatprep.subr.bf16.mxu1 %v5802_v10 }
 0x6a5   :  { %4804 = vmatpush3.bf16.msra.mxu1 %v5802_v10 }
 0x6a6   :  { %4806 = vmatprep.subr.bf16.mxu1 %v5812_v19 }
 0x6a9   :  { %4808 = vmatpush3.bf16.msra.mxu1 %v5812_v19 }
 0x6aa   :  { %4810 = vmatprep.subr.bf16.mxu1 %v5822_v27 }
 0x6ac   :  { %4044 = vmatmul.mubr.f32.vlgmr.msra.gmra.mrb[24].mxu1 %v5708_v9 }
 0x6ad   :  { %4046 = vmatprep.mubr.f32.mxu1 %v5718_v57  ;;  %4812 = vmatpush3.bf16.msra.mxu1 %v5822_v27 }
 0x6ae   :  { %4814 = vmatprep.subr.bf16.mxu1 %v5832_v32 }
 0x6b0   :  { %4047 = vmatmul.mubr.f32.gmra.mrb[26].mxu1 %v5716_v16 }
 0x6b1   :  { %4816 = vmatpush3.bf16.msra.mxu1 %v5832_v32 }
 0x6b2   :  { %4818 = vmatprep.subr.bf16.mxu1 %v5844_v44 }
 0x6b5   :  { %4820 = vmatpush3.bf16.msra.mxu1 %v5844_v44 }
 0x6b6   :  { %4822 = vmatprep.subr.bf16.mxu1 %v5855_v48 }
 0x6b9   :  { %4824 = vmatpush3.bf16.msra.mxu1 %v5855_v48 }
 0x6ba   :  { %4826 = vmatprep.subr.bf16.mxu1 %v5865_v31 }
 0x6bd   :  { %4828 = vmatpush3.bf16.msra.mxu1 %v5865_v31 }
 0x6be   :  { %4830 = vmatprep.subr.bf16.mxu1 %v5875_v46 }
 0x6c1   :  { %4832 = vmatpush3.bf16.msra.mxu1 %v5875_v46 }
 0x6c2   :  { %4834 = vmatprep.subr.bf16.mxu1 %v5885_v55 }
 0x6c5   :  { %4836 = vmatpush3.bf16.msra.mxu1 %v5885_v55 }
 0x6c6   :  { %4838 = vmatprep.subr.bf16.mxu1 %v5895_v0 }
 0x6c9   :  { %4840 = vmatpush3.bf16.msra.mxu1 %v5895_v0 }
 0x6ca   :  { %4842 = vmatprep.subr.bf16.mxu1 %v5906_v15 }
 0x757   :  { %v3993_v38 = vpop.f32.mrb[16].mxu1 }
 0x758   :  { %v1673_v50 = vpop.f32.mrb[17].mxu1 }
 0x759   :  { %4081 = vmatprep.mubr.f32.mxu1 %v1673_v50 }
 0x75a   :  { %4082 = vmatmul.mubr.f32.vlgmr.msra.gmra.mrb[24].mxu1 %v3993_v38 }
 0x75b   :  { %4844 = vmatpush3.bf16.msra.mxu1 %v5906_v15  ;;  %v3996_v13 = vpop.f32.mrb[18].mxu1 }
 0x75c   :  { %4846 = vmatprep.subr.bf16.mxu1 %v5915_v62  ;;  %v1683_v36 = vpop.f32.mrb[19].mxu1 }
 0x75d   :  { %4084 = vmatprep.mubr.f32.mxu1 %v1683_v36 }
 0x75e   :  { %4085 = vmatmul.mubr.f32.gmra.mrb[26].mxu1 %v3996_v13 }
 0x75f   :  { %4848 = vmatpush3.bf16.msra.mxu1 %v5915_v62  ;;  %v4007_v59 = vpop.f32.mrb[20].mxu1 }
 0x760   :  { %4850 = vmatprep.subr.bf16.mxu1 %v5925_v54  ;;  %v1758_v60 = vpop.f32.mrb[21].mxu1 }
 0x761   :  { %4119 = vmatprep.mubr.f32.mxu1 %v1758_v60  ;;  %v6007_v60 = vld [vmem:[%s6186_s1 + $0x10] sm:$0xff] }
 0x763   :  { %4852 = vmatpush3.bf16.msra.mxu1 %v5925_v54  ;;  %v4010_v5 = vpop.f32.mrb[22].mxu1 }
 0x764   :  { %4854 = vmatprep.subr.bf16.mxu1 %v5935_v40  ;;  %v1768_v14 = vpop.f32.mrb[23].mxu1 }
 0x767   :  { %4856 = vmatpush3.bf16.msra.mxu1 %v5935_v40 }
 0x768   :  { %4858 = vmatprep.subr.bf16.mxu1 %v5945_v8 }
 0x76b   :  { %4860 = vmatpush3.bf16.msra.mxu1 %v5945_v8 }
 0x76c   :  { %4862 = vmatprep.subr.bf16.mxu1 %v5955_v24 }
 0x76f   :  { %4864 = vmatpush3.bf16.msra.mxu1 %v5955_v24 }
 0x770   :  { %4866 = vmatprep.subr.bf16.mxu1 %v5965_v33 }
 0x773   :  { %4868 = vmatpush3.bf16.msra.mxu1 %v5965_v33 }
 0x774   :  { %4870 = vmatprep.subr.bf16.mxu1 %v5975_v47 }
 0x777   :  { %4872 = vmatpush3.bf16.msra.mxu1 %v5975_v47 }
 0x77a   :  { %4120 = vmatmul.mubr.f32.vlgmr.msra.gmra.mrb[24].mxu1 %v4007_v59  ;;  %v6000_v59 = vld [vmem:[%s6186_s1 + $0x8] sm:$0xff] }
 0x77b   :  { %4122 = vmatprep.mubr.f32.mxu1 %v1768_v14  ;;  %v6037_v14 = vld [vmem:[%s6186_s1 + $0x30] sm:$0xff] }
 0x77e   :  { %4123 = vmatmul.mubr.f32.gmra.mrb[26].mxu1 %v4010_v5  ;;  %v6029_v5 = vld [vmem:[%s6186_s1 + $0x28] sm:$0xff] }
 0x77f   :  { %4275 = vmatprep.mubr.msk.f32.mxu1 %vm206_vm1, %v5145_v51 }
 0x84d   :  { %v4121_v37 = vpop.f32.mrb[24].mxu1 }
 0x84e   :  { %v2043_v43 = vadd.f32 %v4121_v37, %v5987_v53  ;;  %v2013_v49 = vpop.f32.mrb[25].mxu1 }
 0x84f   :  { %v2042_v52 = vadd.f32 %v5987_v53, %v2013_v49 }
 0x850   :  { %v2047_v58 = vmax.f32 %v2043_v43, 0.0 }
 0x851   :  { %v2046_v61 = vmax.f32 %v2042_v52, 0.0  ;;  %v4124_v3 = vpop.f32.mrb[26].mxu1 }
 0x852   :  { %v2051_v6 = vadd.f32 %v2047_v58, %v5708_v9  ;;  %v2045_v21 = vadd.f32 %v4124_v3, %v5987_v53  ;;  %v2023_v26 = vpop.f32.mrb[27].mxu1 }
 0x853   :  { %v2050_v38 = vadd.f32 %v2046_v61, %v5710_v12  ;;  %v2044_v50 = vadd.f32 %v5987_v53, %v2023_v26 }
 0x854   :  { %v2049_v2 = vmax.f32 %v2045_v21, 0.0 }
 0x855   :  { %v4873_v7 = vpack.c.bf16 %v2051_v6, %v2050_v38  ;;  %v2048_v13 = vmax.f32 %v2044_v50, 0.0 }
 0x856   :  { %v2053_v36 = vadd.f32 %v2049_v2, %v5716_v16 }
 0x857   :  { %v2052_v56 = vadd.f32 %v2048_v13, %v5718_v57  ;;  %4874 = vmatprep.subr.bf16.mxu0 %v4873_v7 }
 0x858   :  { %4876 = vmatpush3.bf16.msra.mxu0 %v4873_v7 }
 0x859   :  { %v4877_v41 = vpack.c.bf16 %v2053_v36, %v2052_v56 }
 0x85b   :  { %4878 = vmatprep.subr.bf16.mxu0 %v4877_v41 }
 0x85c   :  { %4880 = vmatpush3.bf16.msra.mxu0 %v4877_v41 }
 0x85d   :  { %4882 = vmatprep.subr.bf16.mxu0 %v4873_v7 }
 0x85f   :  { %4134 = vmatmul.mubr.msk.f32.vlgmr.msra.gmra.mrb[24].mxu0 %vm206_vm1, %v6000_v59 }
 0x860   :  { %4884 = vmatpush3.bf16.msra.mxu0 %v4873_v7  ;;  %4136 = vmatprep.mubr.msk.f32.mxu0 %vm206_vm1, %v6007_v60 }
 0x861   :  { %4886 = vmatprep.subr.bf16.mxu0 %v4877_v41 }
 0x863   :  { %4137 = vmatmul.mubr.msk.f32.gmra.mrb[26].mxu0 %vm206_vm1, %v6014_v63 }
 0x864   :  { %4888 = vmatpush3.bf16.msra.mxu0 %v4877_v41  ;;  %4147 = vmatprep.mubr.msk.f32.mxu0 %vm206_vm1, %v6021_v1 }
 0x865   :  { %4890 = vmatprep.subr.bf16.mxu0 %v5732_v11 }
 0x867   :  { %4148 = vmatmul.mubr.msk.f32.vlgmr.msra.gmra.mrb[28].mxu0 %vm206_vm1, %v6029_v5 }
 0x868   :  { %4892 = vmatpush3.bf16.msra.mxu0 %v5732_v11  ;;  %4150 = vmatprep.mubr.msk.f32.mxu0 %vm206_vm1, %v6037_v14 }
 0x869   :  { %4894 = vmatprep.subr.bf16.mxu0 %v5745_v34 }
 0x86b   :  { %4151 = vmatmul.mubr.msk.f32.gmra.mrb[30].mxu0 %vm206_vm1, %v6045_v18 }
 0x86c   :  { %4896 = vmatpush3.bf16.msra.mxu0 %v5745_v34  ;;  %4185 = vmatprep.mubr.f32.mxu0 %v2050_v38 }
 0x86d   :  { %4898 = vmatprep.subr.bf16.mxu0 %v5759_v17 }
 0x870   :  { %4900 = vmatpush3.bf16.msra.mxu0 %v5759_v17 }
 0x871   :  { %4902 = vmatprep.subr.bf16.mxu0 %v5772_v35 }
 0x874   :  { %4904 = vmatpush3.bf16.msra.mxu0 %v5772_v35 }
 0x875   :  { %4906 = vmatprep.subr.bf16.mxu0 %v5782_v42 }
 0x878   :  { %4908 = vmatpush3.bf16.msra.mxu0 %v5782_v42 }
 0x879   :  { %4910 = vmatprep.subr.bf16.mxu0 %v5792_v4 }
 0x87c   :  { %4912 = vmatpush3.bf16.msra.mxu0 %v5792_v4 }
 0x87d   :  { %4914 = vmatprep.subr.bf16.mxu0 %v5802_v10 }
 0x880   :  { %4916 = vmatpush3.bf16.msra.mxu0 %v5802_v10 }
 0x881   :  { %4918 = vmatprep.subr.bf16.mxu0 %v5812_v19 }
 0x884   :  { %4920 = vmatpush3.bf16.msra.mxu0 %v5812_v19 }
 0x885   :  { %4922 = vmatprep.subr.bf16.mxu0 %v5822_v27 }
 0x887   :  { %4186 = vmatmul.mubr.f32.vlgmr.msra.gmra.mrb[32].mxu0 %v2051_v6 }
 0x888   :  { %4188 = vmatprep.mubr.f32.mxu0 %v2052_v56  ;;  %4924 = vmatpush3.bf16.msra.mxu0 %v5822_v27 }
 0x889   :  { %4926 = vmatprep.subr.bf16.mxu0 %v5832_v32 }
 0x88b   :  { %4189 = vmatmul.mubr.f32.gmra.mrb[34].mxu0 %v2053_v36 }
 0x88c   :  { %4928 = vmatpush3.bf16.msra.mxu0 %v5832_v32 }
 0x88d   :  { %4930 = vmatprep.subr.bf16.mxu0 %v5844_v44 }
 0x890   :  { %4932 = vmatpush3.bf16.msra.mxu0 %v5844_v44 }
 0x891   :  { %4934 = vmatprep.subr.bf16.mxu0 %v5855_v48 }
 0x894   :  { %4936 = vmatpush3.bf16.msra.mxu0 %v5855_v48 }
 0x895   :  { %4938 = vmatprep.subr.bf16.mxu0 %v5865_v31 }
 0x898   :  { %4940 = vmatpush3.bf16.msra.mxu0 %v5865_v31 }
 0x899   :  { %4942 = vmatprep.subr.bf16.mxu0 %v5875_v46 }
 0x89c   :  { %4944 = vmatpush3.bf16.msra.mxu0 %v5875_v46 }
 0x89d   :  { %4946 = vmatprep.subr.bf16.mxu0 %v5885_v55 }
 0x8a0   :  { %4948 = vmatpush3.bf16.msra.mxu0 %v5885_v55 }
 0x8a1   :  { %4950 = vmatprep.subr.bf16.mxu0 %v5895_v0 }
 0x8a4   :  { %4952 = vmatpush3.bf16.msra.mxu0 %v5895_v0 }
 0x8a5   :  { %4954 = vmatprep.subr.bf16.mxu0 %v5906_v15 }
 0x932   :  { %v4135_v23 = vpop.f32.mrb[24].mxu0 }
 0x933   :  { %v2120_v28 = vpop.f32.mrb[25].mxu0 }
 0x934   :  { %4223 = vmatprep.mubr.f32.mxu0 %v2120_v28 }
 0x935   :  { %4224 = vmatmul.mubr.f32.vlgmr.msra.gmra.mrb[32].mxu0 %v4135_v23 }
 0x936   :  { %4956 = vmatpush3.bf16.msra.mxu0 %v5906_v15  ;;  %v4138_v30 = vpop.f32.mrb[26].mxu0 }
 0x937   :  { %4958 = vmatprep.subr.bf16.mxu0 %v5915_v62  ;;  %v2130_v39 = vpop.f32.mrb[27].mxu0 }
 0x938   :  { %4226 = vmatprep.mubr.f32.mxu0 %v2130_v39 }
 0x939   :  { %4227 = vmatmul.mubr.f32.gmra.mrb[34].mxu0 %v4138_v30 }
 0x93a   :  { %4960 = vmatpush3.bf16.msra.mxu0 %v5915_v62  ;;  %v4149_v45 = vpop.f32.mrb[28].mxu0 }
 0x93b   :  { %4962 = vmatprep.subr.bf16.mxu0 %v5925_v54  ;;  %v2205_v51 = vpop.f32.mrb[29].mxu0 }
 0x93c   :  { %4261 = vmatprep.mubr.f32.mxu0 %v2205_v51 }
 0x93e   :  { %4964 = vmatpush3.bf16.msra.mxu0 %v5925_v54  ;;  %v4152_v37 = vpop.f32.mrb[30].mxu0 }
 0x93f   :  { %4966 = vmatprep.subr.bf16.mxu0 %v5935_v40  ;;  %v2215_v43 = vpop.f32.mrb[31].mxu0 }
 0x942   :  { %4968 = vmatpush3.bf16.msra.mxu0 %v5935_v40 }
 0x943   :  { %4970 = vmatprep.subr.bf16.mxu0 %v5945_v8 }
 0x946   :  { %4972 = vmatpush3.bf16.msra.mxu0 %v5945_v8 }
 0x947   :  { %4974 = vmatprep.subr.bf16.mxu0 %v5955_v24 }
 0x94a   :  { %4976 = vmatpush3.bf16.msra.mxu0 %v5955_v24 }
 0x94b   :  { %4978 = vmatprep.subr.bf16.mxu0 %v5965_v33 }
 0x94e   :  { %4980 = vmatpush3.bf16.msra.mxu0 %v5965_v33 }
 0x94f   :  { %4982 = vmatprep.subr.bf16.mxu0 %v5975_v47 }
 0x952   :  { %4984 = vmatpush3.bf16.msra.mxu0 %v5975_v47 }
 0x955   :  { %4262 = vmatmul.mubr.f32.vlgmr.msra.gmra.mrb[32].mxu0 %v4149_v45 }
 0x956   :  { %4264 = vmatprep.mubr.f32.mxu0 %v2215_v43 }
 0x959   :  { %4265 = vmatmul.mubr.f32.gmra.mrb[34].mxu0 %v4152_v37 }
 0xa28   :  { %v4263_v49 = vpop.f32.mrb[32].mxu0 }
 0xa29   :  { %v2484_v52 = vadd.f32 %v4263_v49, %v5987_v53  ;;  %v2460_v58 = vpop.f32.mrb[33].mxu0 }
 0xa2a   :  { %v2483_v61 = vadd.f32 %v5987_v53, %v2460_v58 }
 0xa2b   :  { %v2488_v3 = vmax.f32 %v2484_v52, 0.0 }
 0xa2c   :  { %v2487_v6 = vmax.f32 %v2483_v61, 0.0  ;;  %v4266_v21 = vpop.f32.mrb[34].mxu0 }
 0xa2d   :  { %v2492_v26 = vadd.f32 %v2488_v3, %v5708_v9  ;;  %v2486_v38 = vadd.f32 %v4266_v21, %v5987_v53  ;;  %v2470_v50 = vpop.f32.mrb[35].mxu0 }
 0xa2e   :  { %v2491_v2 = vadd.f32 %v2487_v6, %v5710_v12  ;;  %v2485_v7 = vadd.f32 %v5987_v53, %v2470_v50 }
 0xa2f   :  { %v2490_v13 = vmax.f32 %v2486_v38, 0.0 }
 0xa30   :  { %v4985_v36 = vpack.c.bf16 %v2492_v26, %v2491_v2  ;;  %v2489_v56 = vmax.f32 %v2485_v7, 0.0 }
 0xa31   :  { %v2494_v41 = vadd.f32 %v2490_v13, %v5716_v16 }
 0xa32   :  { %v2493_v23 = vadd.f32 %v2489_v56, %v5718_v57  ;;  %4986 = vmatprep.subr.bf16.mxu1 %v4985_v36 }
 0xa33   :  { %4988 = vmatpush3.bf16.msra.mxu1 %v4985_v36 }
 0xa34   :  { %v4989_v28 = vpack.c.bf16 %v2494_v41, %v2493_v23 }
 0xa36   :  { %4990 = vmatprep.subr.bf16.mxu1 %v4989_v28 }
 0xa37   :  { %4992 = vmatpush3.bf16.msra.mxu1 %v4989_v28 }
 0xa38   :  { %4994 = vmatprep.subr.bf16.mxu1 %v4985_v36 }
 0xa3a   :  { %4276 = vmatmul.mubr.msk.f32.vlgmr.msra.gmra.mrb[28].mxu1 %vm206_vm1, %v6000_v59 }
 0xa3b   :  { %4996 = vmatpush3.bf16.msra.mxu1 %v4985_v36  ;;  %4278 = vmatprep.mubr.msk.f32.mxu1 %vm206_vm1, %v6007_v60 }
 0xa3c   :  { %4998 = vmatprep.subr.bf16.mxu1 %v4989_v28 }
 0xa3e   :  { %4279 = vmatmul.mubr.msk.f32.gmra.mrb[30].mxu1 %vm206_vm1, %v6014_v63 }
 0xa3f   :  { %5000 = vmatpush3.bf16.msra.mxu1 %v4989_v28  ;;  %4289 = vmatprep.mubr.msk.f32.mxu1 %vm206_vm1, %v6021_v1 }
 0xa40   :  { %5002 = vmatprep.subr.bf16.mxu1 %v5732_v11 }
 0xa42   :  { %4290 = vmatmul.mubr.msk.f32.vlgmr.msra.gmra.mrb[32].mxu1 %vm206_vm1, %v6029_v5 }
 0xa43   :  { %5004 = vmatpush3.bf16.msra.mxu1 %v5732_v11  ;;  %4292 = vmatprep.mubr.msk.f32.mxu1 %vm206_vm1, %v6037_v14 }
 0xa44   :  { %5006 = vmatprep.subr.bf16.mxu1 %v5745_v34 }
 0xa46   :  { %4293 = vmatmul.mubr.msk.f32.gmra.mrb[34].mxu1 %vm206_vm1, %v6045_v18 }
 0xa47   :  { %5008 = vmatpush3.bf16.msra.mxu1 %v5745_v34  ;;  %4327 = vmatprep.mubr.f32.mxu1 %v2491_v2 }
 0xa48   :  { %5010 = vmatprep.subr.bf16.mxu1 %v5759_v17 }
 0xa4b   :  { %5012 = vmatpush3.bf16.msra.mxu1 %v5759_v17 }
 0xa4c   :  { %5014 = vmatprep.subr.bf16.mxu1 %v5772_v35 }
 0xa4f   :  { %5016 = vmatpush3.bf16.msra.mxu1 %v5772_v35 }
 0xa50   :  { %5018 = vmatprep.subr.bf16.mxu1 %v5782_v42 }
 0xa53   :  { %5020 = vmatpush3.bf16.msra.mxu1 %v5782_v42 }
 0xa54   :  { %5022 = vmatprep.subr.bf16.mxu1 %v5792_v4 }
 0xa57   :  { %5024 = vmatpush3.bf16.msra.mxu1 %v5792_v4 }
 0xa58   :  { %5026 = vmatprep.subr.bf16.mxu1 %v5802_v10 }
 0xa5b   :  { %5028 = vmatpush3.bf16.msra.mxu1 %v5802_v10 }
 0xa5c   :  { %5030 = vmatprep.subr.bf16.mxu1 %v5812_v19 }
 0xa5f   :  { %5032 = vmatpush3.bf16.msra.mxu1 %v5812_v19 }
 0xa60   :  { %5034 = vmatprep.subr.bf16.mxu1 %v5822_v27 }
 0xa62   :  { %4328 = vmatmul.mubr.f32.vlgmr.msra.gmra.mrb[36].mxu1 %v2492_v26 }
 0xa63   :  { %4330 = vmatprep.mubr.f32.mxu1 %v2493_v23  ;;  %5036 = vmatpush3.bf16.msra.mxu1 %v5822_v27 }
 0xa64   :  { %5038 = vmatprep.subr.bf16.mxu1 %v5832_v32 }
 0xa66   :  { %4331 = vmatmul.mubr.f32.gmra.mrb[38].mxu1 %v2494_v41 }
 0xa67   :  { %5040 = vmatpush3.bf16.msra.mxu1 %v5832_v32 }
 0xa68   :  { %5042 = vmatprep.subr.bf16.mxu1 %v5844_v44 }
 0xa6b   :  { %5044 = vmatpush3.bf16.msra.mxu1 %v5844_v44 }
 0xa6c   :  { %5046 = vmatprep.subr.bf16.mxu1 %v5855_v48 }
 0xa6f   :  { %5048 = vmatpush3.bf16.msra.mxu1 %v5855_v48 }
 0xa70   :  { %5050 = vmatprep.subr.bf16.mxu1 %v5865_v31 }
 0xa73   :  { %5052 = vmatpush3.bf16.msra.mxu1 %v5865_v31 }
 0xa74   :  { %5054 = vmatprep.subr.bf16.mxu1 %v5875_v46 }
 0xa77   :  { %5056 = vmatpush3.bf16.msra.mxu1 %v5875_v46 }
 0xa78   :  { %5058 = vmatprep.subr.bf16.mxu1 %v5885_v55 }
 0xa7b   :  { %5060 = vmatpush3.bf16.msra.mxu1 %v5885_v55 }
 0xa7c   :  { %5062 = vmatprep.subr.bf16.mxu1 %v5895_v0 }
 0xa7f   :  { %5064 = vmatpush3.bf16.msra.mxu1 %v5895_v0 }
 0xa80   :  { %5066 = vmatprep.subr.bf16.mxu1 %v5906_v15 }
 0xb0d   :  { %v4277_v9 = vpop.f32.mrb[28].mxu1 }
 0xb0e   :  { %v2561_v12 = vpop.f32.mrb[29].mxu1 }
 0xb0f   :  { %4365 = vmatprep.mubr.f32.mxu1 %v2561_v12 }
 0xb10   :  { %4366 = vmatmul.mubr.f32.vlgmr.msra.gmra.mrb[36].mxu1 %v4277_v9 }
 0xb11   :  { %5068 = vmatpush3.bf16.msra.mxu1 %v5906_v15  ;;  %v4280_v16 = vpop.f32.mrb[30].mxu1 }
 0xb12   :  { %5070 = vmatprep.subr.bf16.mxu1 %v5915_v62  ;;  %v2571_v57 = vpop.f32.mrb[31].mxu1 }
 0xb13   :  { %4368 = vmatprep.mubr.f32.mxu1 %v2571_v57 }
 0xb14   :  { %4369 = vmatmul.mubr.f32.gmra.mrb[38].mxu1 %v4280_v16 }
 0xb15   :  { %5072 = vmatpush3.bf16.msra.mxu1 %v5915_v62  ;;  %v4291_v11 = vpop.f32.mrb[32].mxu1 }
 0xb16   :  { %5074 = vmatprep.subr.bf16.mxu1 %v5925_v54  ;;  %v2646_v34 = vpop.f32.mrb[33].mxu1 }
 0xb17   :  { %4403 = vmatprep.mubr.f32.mxu1 %v2646_v34 }
 0xb19   :  { %5076 = vmatpush3.bf16.msra.mxu1 %v5925_v54  ;;  %v4294_v17 = vpop.f32.mrb[34].mxu1 }
 0xb1a   :  { %5078 = vmatprep.subr.bf16.mxu1 %v5935_v40  ;;  %v2656_v35 = vpop.f32.mrb[35].mxu1 }
 0xb1d   :  { %5080 = vmatpush3.bf16.msra.mxu1 %v5935_v40 }
 0xb1e   :  { %5082 = vmatprep.subr.bf16.mxu1 %v5945_v8 }
 0xb21   :  { %5084 = vmatpush3.bf16.msra.mxu1 %v5945_v8 }
 0xb22   :  { %5086 = vmatprep.subr.bf16.mxu1 %v5955_v24 }
 0xb25   :  { %5088 = vmatpush3.bf16.msra.mxu1 %v5955_v24 }
 0xb26   :  { %5090 = vmatprep.subr.bf16.mxu1 %v5965_v33 }
 0xb29   :  { %5092 = vmatpush3.bf16.msra.mxu1 %v5965_v33 }
 0xb2a   :  { %5094 = vmatprep.subr.bf16.mxu1 %v5975_v47 }
 0xb2d   :  { %5096 = vmatpush3.bf16.msra.mxu1 %v5975_v47 }
 0xb30   :  { %4404 = vmatmul.mubr.f32.vlgmr.msra.gmra.mrb[36].mxu1 %v4291_v11 }
 0xb31   :  { %4406 = vmatprep.mubr.f32.mxu1 %v2656_v35 }
 0xb34   :  { %4407 = vmatmul.mubr.f32.gmra.mrb[38].mxu1 %v4294_v17 }
 0xc03   :  { %v4405_v42 = vpop.f32.mrb[36].mxu1 }
 0xc04   :  { %v2925_v4 = vadd.f32 %v4405_v42, %v5987_v53  ;;  %v2901_v10 = vpop.f32.mrb[37].mxu1 }
 0xc05   :  { %v2924_v19 = vadd.f32 %v5987_v53, %v2901_v10 }
 0xc06   :  { %v2929_v27 = vmax.f32 %v2925_v4, 0.0 }
 0xc07   :  { %v2928_v32 = vmax.f32 %v2924_v19, 0.0  ;;  %v4408_v44 = vpop.f32.mrb[38].mxu1 }
 0xc08   :  { %v2933_v48 = vadd.f32 %v2929_v27, %v5255_v20  ;;  %v2927_v31 = vadd.f32 %v4408_v44, %v5987_v53  ;;  %v2911_v46 = vpop.f32.mrb[39].mxu1 }
 0xc09   :  { %v2932_v55 = vadd.f32 %v2928_v32, %v5257_v22  ;;  %v2926_v0 = vadd.f32 %v5987_v53, %v2911_v46 }
 0xc0a   :  { %2937 = vst [vmem:[%s6192_s8 + $0x8] sm:$0xff] %v2933_v48  ;;  %v2931_v15 = vmax.f32 %v2927_v31, 0.0 }
 0xc0b   :  { %2936 = vst [vmem:[%s6192_s8] sm:$0xff] %v2932_v55  ;;  %v2930_v62 = vmax.f32 %v2926_v0, 0.0 }
 0xc0c   :  { %v2935_v54 = vadd.f32 %v2931_v15, %v5261_v25 }
 0xc0d   :  { %v2934_v20 = vadd.f32 %v2930_v62, %v5269_v29 }
 0xc0e   :  { %2939 = vst [vmem:[%s6192_s8 + $0x18] sm:$0xff] %v2935_v54 }
 0xc0f   :  { %2938 = vst [vmem:[%s6192_s8 + $0x10] sm:$0xff] %v2934_v20 }

</bundles_post_ra>
